<compile_context>
chip_gen: v7x
topology: tpu7x:2x2x1
jax: 0.10.0
libtpu: 0.0.40
codegen_flags: <defaults>
</compile_context>

<pallas_src>
import functools

import jax
import jax.numpy as jnp
from jax.experimental import pallas as pl
from jax.experimental.pallas import tpu as pltpu

N_EMBD = 192
N_HEAD = 3
HEAD_SIZE = N_EMBD // N_HEAD
HEAD_PAD = 128            # lane-aligned padded width per head slot
BLOCK_SIZE = 64
LN_EPS = 1e-5


def _layer_norm(x, gamma, beta):
    # PyTorch LayerNorm: biased variance, eps inside sqrt.  f32 on the VPU.
    mu = jnp.mean(x, axis=-1, keepdims=True)
    var = jnp.mean((x - mu) ** 2, axis=-1, keepdims=True)
    return (x - mu) * jax.lax.rsqrt(var + LN_EPS) * gamma + beta


def block_kernel(
    n_head,
    x_ref,                    # (Bb, T, C) f32
    g1_ref, b1_ref,           # (1, C) f32              -- LayerNorm 1
    wqkv_ref,                 # (C, n_head*3*128) bf16  -- fused, padded, Q pre-scaled
    wp_ref, bp_ref,           # (n_head*128, C) bf16, (1, C) f32 -- out projection
    g2_ref, b2_ref,           # (1, C) f32              -- LayerNorm 2
    w1_ref, bb1_ref,          # (C, 4C) bf16, (1, 4C) f32 -- FFN layer 1
    w2_ref, bb2_ref,          # (4C, C) bf16, (1, C) f32  -- FFN layer 2
    o_ref,                    # (Bb, T, C) f32
):
    Bb, T, C = x_ref.shape
    M = Bb * T
    HP = HEAD_PAD

    x = x_ref[...].reshape(M, C)                      # flatten rows (cheap)

    # ---- LayerNorm 1 (f32) ----
    y = _layer_norm(x, g1_ref[...], b1_ref[...])

    # ---- Fused QKV projection: one wide MXU matmul, bf16 in / f32 acc ----
    # NOTE: the reference scales logits by C**-0.5 (n_embd, NOT head_size);
    # that scale is already folded into the packed Q columns.
    qkv = jnp.dot(y.astype(jnp.bfloat16), wqkv_ref[...],
                  preferred_element_type=jnp.float32)  # (M, n_head*3*HP)
    qkv = qkv.reshape(Bb, T, n_head * 3 * HP)

    # ---- Additive causal mask, built once (not per head) ----
    row = jax.lax.broadcasted_iota(jnp.int32, (1, T, T), 1)
    col = jax.lax.broadcasted_iota(jnp.int32, (1, T, T), 2)
    mask_add = jnp.where(col <= row, 0.0, -jnp.inf).astype(jnp.float32)

    # ---- Multi-head causal self-attention ----
    # Output projection is distributed over heads:
    #   concat_h(head_out_h) @ Wp == sum_h head_out_h @ Wp[h-rows]
    # Accumulator starts from the projection bias.
    proj = jnp.broadcast_to(bp_ref[...], (M, C)).astype(jnp.float32)
    for h in range(n_head):                           # static unroll, n_head=3
        base = h * 3 * HP                             # 128-aligned slices only
        q = qkv[:, :, base:base + HP].astype(jnp.bfloat16)
        k = qkv[:, :, base + HP:base + 2 * HP].astype(jnp.bfloat16)
        v = qkv[:, :, base + 2 * HP:base + 3 * HP].astype(jnp.bfloat16)

        wei = jnp.einsum('bqd,bkd->bqk', q, k,
                         preferred_element_type=jnp.float32) + mask_add
        wei = wei - jnp.max(wei, axis=-1, keepdims=True)   # f32 softmax
        p = jnp.exp(wei)
        p = p * pl.reciprocal(jnp.sum(p, axis=-1, keepdims=True), approx=True)

        head_out = jnp.einsum('bqk,bkd->bqd', p.astype(jnp.bfloat16), v,
                              preferred_element_type=jnp.float32)  # (Bb,T,HP)
        proj = proj + jnp.dot(head_out.reshape(M, HP).astype(jnp.bfloat16),
                              wp_ref[h * HP:(h + 1) * HP, :],
                              preferred_element_type=jnp.float32)

    x1 = x + proj                                      # residual 1 (f32)

    # ---- LayerNorm 2 + FeedForward ----
    y2 = _layer_norm(x1, g2_ref[...], b2_ref[...])
    h1 = jnp.dot(y2.astype(jnp.bfloat16), w1_ref[...],
                 preferred_element_type=jnp.float32) + bb1_ref[...]
    h1 = jnp.maximum(h1, 0.0)                          # ReLU (f32)
    ff = jnp.dot(h1.astype(jnp.bfloat16), w2_ref[...],
                 preferred_element_type=jnp.float32) + bb2_ref[...]

    o_ref[...] = (x1 + ff).reshape(Bb, T, C)           # residual 2


@functools.lru_cache(maxsize=1)
def _hw_config():
    """(max_rows_per_step, vmem_limit_bytes, two_tensorcores) per generation."""
    try:
        kind = jax.devices()[0].device_kind.lower()
    except Exception:
        kind = ""
    if "7" in kind:
        # v7x: 64 MiB VMEM per TensorCore, 2 TCs/chip -> keep tiles modest and
        # make the grid shardable across both cores.
        return 2048, 52 * 1024 * 1024, True
    if "v5" in kind or "v6" in kind:
        # v5e/v6e: 128 MiB physical VMEM, 1 TC -> big tiles amortize the
        # ~0.35 us/step pipeline overhead and lengthen the MXU M stream.
        return 4096, 96 * 1024 * 1024, False
    # Unknown generation: conservative sizing.
    return 1024, 48 * 1024 * 1024, False


def _pick_batch_block(B, T, max_rows, two_cores):
    cap = max(1, max_rows // max(T, 1))
    if two_cores and B >= 2:
        cap = min(cap, B // 2)        # guarantee grid >= 2 so both TCs work
    bb = max(1, min(B, cap))
    while B % bb != 0:
        bb -= 1
    return bb


def prepack_params(p):
    """One-time host/device repacking of weights for the kernel.

    - Q/K/V fused into one (C, n_head*3*128) bf16 matrix; each head's Q, K, V
      occupies its own zero-padded 128-wide (lane-aligned) column slot.
    - The attention scale C**-0.5 is folded into the Q columns.
    - The output-projection weight is row-padded to (n_head*128, C) so the
      padded head outputs can be used directly (pad rows are zero).
    """
    C, hs, HP = N_EMBD, HEAD_SIZE, HEAD_PAD
    scale = float(C) ** (-0.5)

    wqkv = jnp.zeros((C, N_HEAD * 3 * HP), jnp.float32)
    wp_pad = jnp.zeros((N_HEAD * HP, C), jnp.float32)
    for h in range(N_HEAD):
        base = h * 3 * HP
        wqkv = wqkv.at[:, base:base + hs].set(p["wq"][h] * scale)
        wqkv = wqkv.at[:, base + HP:base + HP + hs].set(p["wk"][h])
        wqkv = wqkv.at[:, base + 2 * HP:base + 2 * HP + hs].set(p["wv"][h])
        wp_pad = wp_pad.at[h * HP:h * HP + hs, :].set(
            p["wp"][h * hs:(h + 1) * hs, :])

    return {
        "g1": p["g1"], "b1": p["b1"],
        "wqkv": wqkv.astype(jnp.bfloat16),
        "wp": wp_pad.astype(jnp.bfloat16),
        "bp": p["bp"],
        "g2": p["g2"], "b2": p["b2"],
        "w1": p["w1"].astype(jnp.bfloat16), "bb1": p["bb1"],
        "w2": p["w2"].astype(jnp.bfloat16), "bb2": p["bb2"],
    }


def gpt_block(x, packed):
    """x: (B, T, C) float32; `packed` = prepack_params(params) (computed once).
    Grid over blocks of Bb sequences; each step processes a (Bb, T, C) tile."""
    B, T, C = x.shape
    assert C == N_EMBD and T <= BLOCK_SIZE

    max_rows, vmem_limit, two_cores = _hw_config()
    bb = _pick_batch_block(B, T, max_rows, two_cores)
    grid = (B // bb,)

    def const_spec(a):
        # whole-array BlockSpec with constant index map -> fetched once,
        # stays resident in VMEM across grid steps.
        nd = a.ndim
        return pl.BlockSpec(a.shape, lambda i, _nd=nd: (0,) * _nd)

    in_specs = [
        pl.BlockSpec((bb, T, C), lambda i: (i, 0, 0)),          # x
        const_spec(packed["g1"]), const_spec(packed["b1"]),
        const_spec(packed["wqkv"]),
        const_spec(packed["wp"]), const_spec(packed["bp"]),
        const_spec(packed["g2"]), const_spec(packed["b2"]),
        const_spec(packed["w1"]), const_spec(packed["bb1"]),
        const_spec(packed["w2"]), const_spec(packed["bb2"]),
    ]

    kernel = functools.partial(block_kernel, N_HEAD)

    return pl.pallas_call(
        kernel,
        out_shape=jax.ShapeDtypeStruct((B, T, C), jnp.float32),
        grid_spec=pltpu.PrefetchScalarGridSpec(
            num_scalar_prefetch=0,
            grid=grid,
            in_specs=in_specs,
            out_specs=pl.BlockSpec((bb, T, C), lambda i: (i, 0, 0)),
        ),
        compiler_params=pltpu.CompilerParams(
            dimension_semantics=("parallel",),
            vmem_limit_bytes=vmem_limit),
    )(x, packed["g1"], packed["b1"], packed["wqkv"], packed["wp"],
      packed["bp"], packed["g2"], packed["b2"], packed["w1"], packed["bb1"],
      packed["w2"], packed["bb2"])


def init_params(key):
    """Deterministic synthetic parameters. Linear weights are stored as
    (in_features, out_features), i.e. already transposed w.r.t. torch.nn.Linear."""
    ks = jax.random.split(key, 8)
    s = 0.02
    return {
        "g1": jnp.ones((1, N_EMBD), jnp.float32),
        "b1": jnp.zeros((1, N_EMBD), jnp.float32),
        "wq": s * jax.random.normal(ks[0], (N_HEAD, N_EMBD, HEAD_SIZE), jnp.float32),
        "wk": s * jax.random.normal(ks[1], (N_HEAD, N_EMBD, HEAD_SIZE), jnp.float32),
        "wv": s * jax.random.normal(ks[2], (N_HEAD, N_EMBD, HEAD_SIZE), jnp.float32),
        "wp": s * jax.random.normal(ks[3], (N_EMBD, N_EMBD), jnp.float32),
        "bp": s * jax.random.normal(ks[4], (1, N_EMBD), jnp.float32),
        "g2": jnp.ones((1, N_EMBD), jnp.float32),
        "b2": jnp.zeros((1, N_EMBD), jnp.float32),
        "w1": s * jax.random.normal(ks[5], (N_EMBD, 4 * N_EMBD), jnp.float32),
        "bb1": s * jax.random.normal(ks[6], (1, 4 * N_EMBD), jnp.float32),
        "w2": s * jax.random.normal(ks[7], (4 * N_EMBD, N_EMBD), jnp.float32),
        "bb2": jnp.zeros((1, N_EMBD), jnp.float32),
    }


def reference_block(x, p):
    """Pure-JAX f32 reference (eval-mode dropout) for sanity checking."""
    def ln(v, g, b):
        mu = jnp.mean(v, -1, keepdims=True)
        var = jnp.mean((v - mu) ** 2, -1, keepdims=True)
        return (v - mu) / jnp.sqrt(var + LN_EPS) * g + b

    B, T, C = x.shape
    y = ln(x, p["g1"], p["b1"])
    mask = jnp.tril(jnp.ones((T, T), bool))
    outs = []
    for h in range(N_HEAD):
        q = y @ p["wq"][h]
        k = y @ p["wk"][h]
        v = y @ p["wv"][h]
        wei = (q @ jnp.swapaxes(k, -1, -2)) * (C ** -0.5)
        wei = jnp.where(mask, wei, -jnp.inf)
        wei = jax.nn.softmax(wei, axis=-1)
        outs.append(wei @ v)
    sa = jnp.concatenate(outs, -1) @ p["wp"] + p["bp"]
    x1 = x + sa
    y2 = ln(x1, p["g2"], p["b2"])
    ff = jnp.maximum(y2 @ p["w1"] + p["bb1"], 0.0) @ p["w2"] + p["bb2"]
    return x1 + ff


if __name__ == "__main__":
    key = jax.random.PRNGKey(0)
    kx, kx2, kp = jax.random.split(key, 3)
    params = init_params(kp)
    packed = prepack_params(params)      # one-time repack; not on the hot path

    # Small shape (matches the spec's axis convention): B=2, T=8, C=192.
    B, T = 2, 8
    x = jax.random.normal(kx, (B, T, N_EMBD), jnp.float32)
    out = jax.block_until_ready(gpt_block(x, packed))
    ref = reference_block(x, params)
    assert out.shape == (B, T, N_EMBD)
    assert bool(jnp.all(jnp.isfinite(out)))
    assert bool(jnp.allclose(out, ref, rtol=2e-2, atol=2e-2))

    # Steady-state shape: full context length T = block_size = 64.
    B2, T2 = 4, BLOCK_SIZE
    x2 = jax.random.normal(kx2, (B2, T2, N_EMBD), jnp.float32)
    out2 = jax.block_until_ready(gpt_block(x2, packed))
    ref2 = reference_block(x2, params)
    assert out2.shape == (B2, T2, N_EMBD)
    assert bool(jnp.all(jnp.isfinite(out2)))
    assert bool(jnp.allclose(out2, ref2, rtol=2e-2, atol=2e-2))

    print("KERNEL_OK")
</pallas_src>

<mosaic_0001>
module attributes {stable_mosaic.version = 11 : i64} {
  func.func @block_kernel(%arg0: i32, %arg1: memref<2x8x192xf32, #tpu.memory_space<vmem>>, %arg2: memref<1x192xf32, #tpu.memory_space<vmem>>, %arg3: memref<1x192xf32, #tpu.memory_space<vmem>>, %arg4: memref<192x1152xbf16, #tpu.memory_space<vmem>>, %arg5: memref<384x192xbf16, #tpu.memory_space<vmem>>, %arg6: memref<1x192xf32, #tpu.memory_space<vmem>>, %arg7: memref<1x192xf32, #tpu.memory_space<vmem>>, %arg8: memref<1x192xf32, #tpu.memory_space<vmem>>, %arg9: memref<192x768xbf16, #tpu.memory_space<vmem>>, %arg10: memref<1x768xf32, #tpu.memory_space<vmem>>, %arg11: memref<768x192xbf16, #tpu.memory_space<vmem>>, %arg12: memref<1x192xf32, #tpu.memory_space<vmem>>, %arg13: memref<2x8x192xf32, #tpu.memory_space<vmem>>) attributes {dimension_semantics = [#tpu.dimension_semantics<parallel>], iteration_bounds = array<i64: 1>, scalar_prefetch = 0 : i64, scratch_operands = 0 : i64, tpu.core_type = #tpu.core_type<tc>, window_params = [{transform_indices = @transform_0, window_bounds = array<i64: 2, 8, 192>}, {pipeline_mode = #tpu.pipeline_mode<synchronous>, transform_indices = @transform_1, window_bounds = array<i64: 1, 192>}, {pipeline_mode = #tpu.pipeline_mode<synchronous>, transform_indices = @transform_2, window_bounds = array<i64: 1, 192>}, {pipeline_mode = #tpu.pipeline_mode<synchronous>, transform_indices = @transform_3, window_bounds = array<i64: 192, 1152>}, {pipeline_mode = #tpu.pipeline_mode<synchronous>, transform_indices = @transform_4, window_bounds = array<i64: 384, 192>}, {pipeline_mode = #tpu.pipeline_mode<synchronous>, transform_indices = @transform_5, window_bounds = array<i64: 1, 192>}, {pipeline_mode = #tpu.pipeline_mode<synchronous>, transform_indices = @transform_6, window_bounds = array<i64: 1, 192>}, {pipeline_mode = #tpu.pipeline_mode<synchronous>, transform_indices = @transform_7, window_bounds = array<i64: 1, 192>}, {pipeline_mode = #tpu.pipeline_mode<synchronous>, transform_indices = @transform_8, window_bounds = array<i64: 192, 768>}, {pipeline_mode = #tpu.pipeline_mode<synchronous>, transform_indices = @transform_9, window_bounds = array<i64: 1, 768>}, {pipeline_mode = #tpu.pipeline_mode<synchronous>, transform_indices = @transform_10, window_bounds = array<i64: 768, 192>}, {pipeline_mode = #tpu.pipeline_mode<synchronous>, transform_indices = @transform_11, window_bounds = array<i64: 1, 192>}, {transform_indices = @transform_12, window_bounds = array<i64: 2, 8, 192>}]} {
    %c0 = arith.constant 0 : index
    %c0_0 = arith.constant 0 : index
    %c0_1 = arith.constant 0 : index
    %0 = vector.load %arg1[%c0, %c0_0, %c0_1] : memref<2x8x192xf32, #tpu.memory_space<vmem>>, vector<2x8x192xf32>
    %1 = vector.shape_cast %0 : vector<2x8x192xf32> to vector<16x192xf32>
    %c0_2 = arith.constant 0 : index
    %c0_3 = arith.constant 0 : index
    %2 = vector.load %arg2[%c0_2, %c0_3] : memref<1x192xf32, #tpu.memory_space<vmem>>, vector<1x192xf32>
    %c0_4 = arith.constant 0 : index
    %c0_5 = arith.constant 0 : index
    %3 = vector.load %arg3[%c0_4, %c0_5] : memref<1x192xf32, #tpu.memory_space<vmem>>, vector<1x192xf32>
    %cst = arith.constant dense<0.000000e+00> : vector<16xf32>
    %4 = vector.multi_reduction <add>, %1, %cst [1] : vector<16x192xf32> to vector<16xf32>
    %5 = vector.shape_cast %4 : vector<16xf32> to vector<16x1xf32>
    %cst_6 = arith.constant 1.920000e+02 : f32
    %6 = vector.broadcast %cst_6 : f32 to vector<16x1xf32>
    %7 = arith.divf %5, %6 : vector<16x1xf32>
    %8 = vector.broadcast %7 : vector<16x1xf32> to vector<16x192xf32>
    %9 = arith.subf %1, %8 : vector<16x192xf32>
    %10 = arith.mulf %9, %9 : vector<16x192xf32>
    %cst_7 = arith.constant dense<0.000000e+00> : vector<16xf32>
    %11 = vector.multi_reduction <add>, %10, %cst_7 [1] : vector<16x192xf32> to vector<16xf32>
    %12 = vector.shape_cast %11 : vector<16xf32> to vector<16x1xf32>
    %cst_8 = arith.constant 1.920000e+02 : f32
    %13 = vector.broadcast %cst_8 : f32 to vector<16x1xf32>
    %14 = arith.divf %12, %13 : vector<16x1xf32>
    %15 = vector.broadcast %7 : vector<16x1xf32> to vector<16x192xf32>
    %16 = arith.subf %1, %15 : vector<16x192xf32>
    %cst_9 = arith.constant 9.99999974E-6 : f32
    %17 = vector.broadcast %cst_9 : f32 to vector<16x1xf32>
    %18 = arith.addf %14, %17 : vector<16x1xf32>
    %19 = math.rsqrt %18 : vector<16x1xf32>
    %20 = vector.broadcast %19 : vector<16x1xf32> to vector<16x192xf32>
    %21 = arith.mulf %16, %20 : vector<16x192xf32>
    %22 = vector.broadcast %2 : vector<1x192xf32> to vector<16x192xf32>
    %23 = arith.mulf %21, %22 : vector<16x192xf32>
    %24 = vector.broadcast %3 : vector<1x192xf32> to vector<16x192xf32>
    %25 = arith.addf %23, %24 : vector<16x192xf32>
    %26 = arith.truncf %25 : vector<16x192xf32> to vector<16x192xbf16>
    %c0_10 = arith.constant 0 : index
    %c0_11 = arith.constant 0 : index
    %27 = vector.load %arg4[%c0_10, %c0_11] : memref<192x1152xbf16, #tpu.memory_space<vmem>>, vector<192x1152xbf16>
    %cst_12 = arith.constant dense<0.000000e+00> : vector<16x1152xf32>
    %28 = tpu.matmul %26, %27, %cst_12 {dimension_numbers = #tpu.dot_dimension_numbers<[1], [0], [0], [1], [0, 0, 1, 1], [], []>} : vector<16x192xbf16>, vector<192x1152xbf16>, vector<16x1152xf32> -> vector<16x1152xf32>
    %29 = vector.shape_cast %28 : vector<16x1152xf32> to vector<2x8x1152xf32>
    %30 = tpu.iota {dimensions = array<i32: 1>} : vector<1x8x8xi32>
    %31 = tpu.iota {dimensions = array<i32: 2>} : vector<1x8x8xi32>
    %32 = arith.cmpi sle, %31, %30 : vector<1x8x8xi32>
    %cst_13 = arith.constant 0.000000e+00 : f32
    %cst_14 = arith.constant 0xFF800000 : f32
    %33 = vector.broadcast %cst_13 : f32 to vector<1x8x8xf32>
    %34 = vector.broadcast %cst_14 : f32 to vector<1x8x8xf32>
    %35 = arith.select %32, %33, %34 : vector<1x8x8xi1>, vector<1x8x8xf32>
    %c0_15 = arith.constant 0 : index
    %c0_16 = arith.constant 0 : index
    %36 = vector.load %arg6[%c0_15, %c0_16] : memref<1x192xf32, #tpu.memory_space<vmem>>, vector<1x192xf32>
    %37 = vector.shape_cast %36 : vector<1x192xf32> to vector<1x192xf32>
    %38 = vector.broadcast %37 : vector<1x192xf32> to vector<16x192xf32>
    %39 = vector.extract_strided_slice %29 {offsets = [0, 0, 0], sizes = [2, 8, 128], strides = [1, 1, 1]} : vector<2x8x1152xf32> to vector<2x8x128xf32>
    %40 = arith.truncf %39 : vector<2x8x128xf32> to vector<2x8x128xbf16>
    %41 = vector.extract_strided_slice %29 {offsets = [0, 0, 128], sizes = [2, 8, 128], strides = [1, 1, 1]} : vector<2x8x1152xf32> to vector<2x8x128xf32>
    %42 = arith.truncf %41 : vector<2x8x128xf32> to vector<2x8x128xbf16>
    %43 = vector.extract_strided_slice %29 {offsets = [0, 0, 256], sizes = [2, 8, 128], strides = [1, 1, 1]} : vector<2x8x1152xf32> to vector<2x8x128xf32>
    %44 = arith.truncf %43 : vector<2x8x128xf32> to vector<2x8x128xbf16>
    "tpu.trace_start"() <{level = 10 : i32, message = "bqd,bkd->bqk"}> : () -> ()
    %cst_17 = arith.constant dense<0.000000e+00> : vector<2x8x8xf32>
    %45 = tpu.matmul %40, %42, %cst_17 {dimension_numbers = #tpu.dot_dimension_numbers<[2], [2], [1], [1], [0, 0, 0, 1, 1, 1], [0], [0]>} : vector<2x8x128xbf16>, vector<2x8x128xbf16>, vector<2x8x8xf32> -> vector<2x8x8xf32>
    "tpu.trace_stop"() : () -> ()
    %46 = vector.broadcast %35 : vector<1x8x8xf32> to vector<2x8x8xf32>
    %47 = arith.addf %45, %46 : vector<2x8x8xf32>
    %cst_18 = arith.constant dense<0xFF800000> : vector<2x8xf32>
    %48 = vector.multi_reduction <maximumf>, %47, %cst_18 [2] : vector<2x8x8xf32> to vector<2x8xf32>
    %49 = vector.shape_cast %48 : vector<2x8xf32> to vector<2x8x1xf32>
    %50 = vector.broadcast %49 : vector<2x8x1xf32> to vector<2x8x8xf32>
    %51 = arith.subf %47, %50 : vector<2x8x8xf32>
    %52 = math.exp %51 : vector<2x8x8xf32>
    %cst_19 = arith.constant dense<0.000000e+00> : vector<2x8xf32>
    %53 = vector.multi_reduction <add>, %52, %cst_19 [2] : vector<2x8x8xf32> to vector<2x8xf32>
    %54 = vector.shape_cast %53 : vector<2x8xf32> to vector<2x8x1xf32>
    %55 = tpu.reciprocal %54 {approx = true} : vector<2x8x1xf32> -> vector<2x8x1xf32>
    %56 = vector.broadcast %55 : vector<2x8x1xf32> to vector<2x8x8xf32>
    %57 = arith.mulf %52, %56 : vector<2x8x8xf32>
    %58 = arith.truncf %57 : vector<2x8x8xf32> to vector<2x8x8xbf16>
    "tpu.trace_start"() <{level = 10 : i32, message = "bqk,bkd->bqd"}> : () -> ()
    %cst_20 = arith.constant dense<0.000000e+00> : vector<2x8x128xf32>
    %59 = tpu.matmul %58, %44, %cst_20 {dimension_numbers = #tpu.dot_dimension_numbers<[2], [1], [1], [2], [0, 0, 0, 1, 1, 2], [0], [0]>} : vector<2x8x8xbf16>, vector<2x8x128xbf16>, vector<2x8x128xf32> -> vector<2x8x128xf32>
    "tpu.trace_stop"() : () -> ()
    %60 = vector.shape_cast %59 : vector<2x8x128xf32> to vector<16x128xf32>
    %61 = arith.truncf %60 : vector<16x128xf32> to vector<16x128xbf16>
    %c0_21 = arith.constant 0 : index
    %c0_22 = arith.constant 0 : index
    %62 = vector.load %arg5[%c0_21, %c0_22] : memref<384x192xbf16, #tpu.memory_space<vmem>>, vector<128x192xbf16>
    %cst_23 = arith.constant dense<0.000000e+00> : vector<16x192xf32>
    %63 = tpu.matmul %61, %62, %cst_23 {dimension_numbers = #tpu.dot_dimension_numbers<[1], [0], [0], [1], [0, 0, 1, 1], [], []>} : vector<16x128xbf16>, vector<128x192xbf16>, vector<16x192xf32> -> vector<16x192xf32>
    %64 = arith.addf %38, %63 : vector<16x192xf32>
    %65 = vector.extract_strided_slice %29 {offsets = [0, 0, 384], sizes = [2, 8, 128], strides = [1, 1, 1]} : vector<2x8x1152xf32> to vector<2x8x128xf32>
    %66 = arith.truncf %65 : vector<2x8x128xf32> to vector<2x8x128xbf16>
    %67 = vector.extract_strided_slice %29 {offsets = [0, 0, 512], sizes = [2, 8, 128], strides = [1, 1, 1]} : vector<2x8x1152xf32> to vector<2x8x128xf32>
    %68 = arith.truncf %67 : vector<2x8x128xf32> to vector<2x8x128xbf16>
    %69 = vector.extract_strided_slice %29 {offsets = [0, 0, 640], sizes = [2, 8, 128], strides = [1, 1, 1]} : vector<2x8x1152xf32> to vector<2x8x128xf32>
    %70 = arith.truncf %69 : vector<2x8x128xf32> to vector<2x8x128xbf16>
    "tpu.trace_start"() <{level = 10 : i32, message = "bqd,bkd->bqk"}> : () -> ()
    %cst_24 = arith.constant dense<0.000000e+00> : vector<2x8x8xf32>
    %71 = tpu.matmul %66, %68, %cst_24 {dimension_numbers = #tpu.dot_dimension_numbers<[2], [2], [1], [1], [0, 0, 0, 1, 1, 1], [0], [0]>} : vector<2x8x128xbf16>, vector<2x8x128xbf16>, vector<2x8x8xf32> -> vector<2x8x8xf32>
    "tpu.trace_stop"() : () -> ()
    %72 = vector.broadcast %35 : vector<1x8x8xf32> to vector<2x8x8xf32>
    %73 = arith.addf %71, %72 : vector<2x8x8xf32>
    %cst_25 = arith.constant dense<0xFF800000> : vector<2x8xf32>
    %74 = vector.multi_reduction <maximumf>, %73, %cst_25 [2] : vector<2x8x8xf32> to vector<2x8xf32>
    %75 = vector.shape_cast %74 : vector<2x8xf32> to vector<2x8x1xf32>
    %76 = vector.broadcast %75 : vector<2x8x1xf32> to vector<2x8x8xf32>
    %77 = arith.subf %73, %76 : vector<2x8x8xf32>
    %78 = math.exp %77 : vector<2x8x8xf32>
    %cst_26 = arith.constant dense<0.000000e+00> : vector<2x8xf32>
    %79 = vector.multi_reduction <add>, %78, %cst_26 [2] : vector<2x8x8xf32> to vector<2x8xf32>
    %80 = vector.shape_cast %79 : vector<2x8xf32> to vector<2x8x1xf32>
    %81 = tpu.reciprocal %80 {approx = true} : vector<2x8x1xf32> -> vector<2x8x1xf32>
    %82 = vector.broadcast %81 : vector<2x8x1xf32> to vector<2x8x8xf32>
    %83 = arith.mulf %78, %82 : vector<2x8x8xf32>
    %84 = arith.truncf %83 : vector<2x8x8xf32> to vector<2x8x8xbf16>
    "tpu.trace_start"() <{level = 10 : i32, message = "bqk,bkd->bqd"}> : () -> ()
    %cst_27 = arith.constant dense<0.000000e+00> : vector<2x8x128xf32>
    %85 = tpu.matmul %84, %70, %cst_27 {dimension_numbers = #tpu.dot_dimension_numbers<[2], [1], [1], [2], [0, 0, 0, 1, 1, 2], [0], [0]>} : vector<2x8x8xbf16>, vector<2x8x128xbf16>, vector<2x8x128xf32> -> vector<2x8x128xf32>
    "tpu.trace_stop"() : () -> ()
    %86 = vector.shape_cast %85 : vector<2x8x128xf32> to vector<16x128xf32>
    %87 = arith.truncf %86 : vector<16x128xf32> to vector<16x128xbf16>
    %c128 = arith.constant 128 : index
    %c0_28 = arith.constant 0 : index
    %88 = vector.load %arg5[%c128, %c0_28] : memref<384x192xbf16, #tpu.memory_space<vmem>>, vector<128x192xbf16>
    %cst_29 = arith.constant dense<0.000000e+00> : vector<16x192xf32>
    %89 = tpu.matmul %87, %88, %cst_29 {dimension_numbers = #tpu.dot_dimension_numbers<[1], [0], [0], [1], [0, 0, 1, 1], [], []>} : vector<16x128xbf16>, vector<128x192xbf16>, vector<16x192xf32> -> vector<16x192xf32>
    %90 = arith.addf %64, %89 : vector<16x192xf32>
    %91 = vector.extract_strided_slice %29 {offsets = [0, 0, 768], sizes = [2, 8, 128], strides = [1, 1, 1]} : vector<2x8x1152xf32> to vector<2x8x128xf32>
    %92 = arith.truncf %91 : vector<2x8x128xf32> to vector<2x8x128xbf16>
    %93 = vector.extract_strided_slice %29 {offsets = [0, 0, 896], sizes = [2, 8, 128], strides = [1, 1, 1]} : vector<2x8x1152xf32> to vector<2x8x128xf32>
    %94 = arith.truncf %93 : vector<2x8x128xf32> to vector<2x8x128xbf16>
    %95 = vector.extract_strided_slice %29 {offsets = [0, 0, 1024], sizes = [2, 8, 128], strides = [1, 1, 1]} : vector<2x8x1152xf32> to vector<2x8x128xf32>
    %96 = arith.truncf %95 : vector<2x8x128xf32> to vector<2x8x128xbf16>
    "tpu.trace_start"() <{level = 10 : i32, message = "bqd,bkd->bqk"}> : () -> ()
    %cst_30 = arith.constant dense<0.000000e+00> : vector<2x8x8xf32>
    %97 = tpu.matmul %92, %94, %cst_30 {dimension_numbers = #tpu.dot_dimension_numbers<[2], [2], [1], [1], [0, 0, 0, 1, 1, 1], [0], [0]>} : vector<2x8x128xbf16>, vector<2x8x128xbf16>, vector<2x8x8xf32> -> vector<2x8x8xf32>
    "tpu.trace_stop"() : () -> ()
    %98 = vector.broadcast %35 : vector<1x8x8xf32> to vector<2x8x8xf32>
    %99 = arith.addf %97, %98 : vector<2x8x8xf32>
    %cst_31 = arith.constant dense<0xFF800000> : vector<2x8xf32>
    %100 = vector.multi_reduction <maximumf>, %99, %cst_31 [2] : vector<2x8x8xf32> to vector<2x8xf32>
    %101 = vector.shape_cast %100 : vector<2x8xf32> to vector<2x8x1xf32>
    %102 = vector.broadcast %101 : vector<2x8x1xf32> to vector<2x8x8xf32>
    %103 = arith.subf %99, %102 : vector<2x8x8xf32>
    %104 = math.exp %103 : vector<2x8x8xf32>
    %cst_32 = arith.constant dense<0.000000e+00> : vector<2x8xf32>
    %105 = vector.multi_reduction <add>, %104, %cst_32 [2] : vector<2x8x8xf32> to vector<2x8xf32>
    %106 = vector.shape_cast %105 : vector<2x8xf32> to vector<2x8x1xf32>
    %107 = tpu.reciprocal %106 {approx = true} : vector<2x8x1xf32> -> vector<2x8x1xf32>
    %108 = vector.broadcast %107 : vector<2x8x1xf32> to vector<2x8x8xf32>
    %109 = arith.mulf %104, %108 : vector<2x8x8xf32>
    %110 = arith.truncf %109 : vector<2x8x8xf32> to vector<2x8x8xbf16>
    "tpu.trace_start"() <{level = 10 : i32, message = "bqk,bkd->bqd"}> : () -> ()
    %cst_33 = arith.constant dense<0.000000e+00> : vector<2x8x128xf32>
    %111 = tpu.matmul %110, %96, %cst_33 {dimension_numbers = #tpu.dot_dimension_numbers<[2], [1], [1], [2], [0, 0, 0, 1, 1, 2], [0], [0]>} : vector<2x8x8xbf16>, vector<2x8x128xbf16>, vector<2x8x128xf32> -> vector<2x8x128xf32>
    "tpu.trace_stop"() : () -> ()
    %112 = vector.shape_cast %111 : vector<2x8x128xf32> to vector<16x128xf32>
    %113 = arith.truncf %112 : vector<16x128xf32> to vector<16x128xbf16>
    %c256 = arith.constant 256 : index
    %c0_34 = arith.constant 0 : index
    %114 = vector.load %arg5[%c256, %c0_34] : memref<384x192xbf16, #tpu.memory_space<vmem>>, vector<128x192xbf16>
    %cst_35 = arith.constant dense<0.000000e+00> : vector<16x192xf32>
    %115 = tpu.matmul %113, %114, %cst_35 {dimension_numbers = #tpu.dot_dimension_numbers<[1], [0], [0], [1], [0, 0, 1, 1], [], []>} : vector<16x128xbf16>, vector<128x192xbf16>, vector<16x192xf32> -> vector<16x192xf32>
    %116 = arith.addf %90, %115 : vector<16x192xf32>
    %117 = arith.addf %1, %116 : vector<16x192xf32>
    %c0_36 = arith.constant 0 : index
    %c0_37 = arith.constant 0 : index
    %118 = vector.load %arg7[%c0_36, %c0_37] : memref<1x192xf32, #tpu.memory_space<vmem>>, vector<1x192xf32>
    %c0_38 = arith.constant 0 : index
    %c0_39 = arith.constant 0 : index
    %119 = vector.load %arg8[%c0_38, %c0_39] : memref<1x192xf32, #tpu.memory_space<vmem>>, vector<1x192xf32>
    %cst_40 = arith.constant dense<0.000000e+00> : vector<16xf32>
    %120 = vector.multi_reduction <add>, %117, %cst_40 [1] : vector<16x192xf32> to vector<16xf32>
    %121 = vector.shape_cast %120 : vector<16xf32> to vector<16x1xf32>
    %cst_41 = arith.constant 1.920000e+02 : f32
    %122 = vector.broadcast %cst_41 : f32 to vector<16x1xf32>
    %123 = arith.divf %121, %122 : vector<16x1xf32>
    %124 = vector.broadcast %123 : vector<16x1xf32> to vector<16x192xf32>
    %125 = arith.subf %117, %124 : vector<16x192xf32>
    %126 = arith.mulf %125, %125 : vector<16x192xf32>
    %cst_42 = arith.constant dense<0.000000e+00> : vector<16xf32>
    %127 = vector.multi_reduction <add>, %126, %cst_42 [1] : vector<16x192xf32> to vector<16xf32>
    %128 = vector.shape_cast %127 : vector<16xf32> to vector<16x1xf32>
    %cst_43 = arith.constant 1.920000e+02 : f32
    %129 = vector.broadcast %cst_43 : f32 to vector<16x1xf32>
    %130 = arith.divf %128, %129 : vector<16x1xf32>
    %131 = vector.broadcast %123 : vector<16x1xf32> to vector<16x192xf32>
    %132 = arith.subf %117, %131 : vector<16x192xf32>
    %cst_44 = arith.constant 9.99999974E-6 : f32
    %133 = vector.broadcast %cst_44 : f32 to vector<16x1xf32>
    %134 = arith.addf %130, %133 : vector<16x1xf32>
    %135 = math.rsqrt %134 : vector<16x1xf32>
    %136 = vector.broadcast %135 : vector<16x1xf32> to vector<16x192xf32>
    %137 = arith.mulf %132, %136 : vector<16x192xf32>
    %138 = vector.broadcast %118 : vector<1x192xf32> to vector<16x192xf32>
    %139 = arith.mulf %137, %138 : vector<16x192xf32>
    %140 = vector.broadcast %119 : vector<1x192xf32> to vector<16x192xf32>
    %141 = arith.addf %139, %140 : vector<16x192xf32>
    %142 = arith.truncf %141 : vector<16x192xf32> to vector<16x192xbf16>
    %c0_45 = arith.constant 0 : index
    %c0_46 = arith.constant 0 : index
    %143 = vector.load %arg9[%c0_45, %c0_46] : memref<192x768xbf16, #tpu.memory_space<vmem>>, vector<192x768xbf16>
    %cst_47 = arith.constant dense<0.000000e+00> : vector<16x768xf32>
    %144 = tpu.matmul %142, %143, %cst_47 {dimension_numbers = #tpu.dot_dimension_numbers<[1], [0], [0], [1], [0, 0, 1, 1], [], []>} : vector<16x192xbf16>, vector<192x768xbf16>, vector<16x768xf32> -> vector<16x768xf32>
    %c0_48 = arith.constant 0 : index
    %c0_49 = arith.constant 0 : index
    %145 = vector.load %arg10[%c0_48, %c0_49] : memref<1x768xf32, #tpu.memory_space<vmem>>, vector<1x768xf32>
    %146 = vector.broadcast %145 : vector<1x768xf32> to vector<16x768xf32>
    %147 = arith.addf %144, %146 : vector<16x768xf32>
    %cst_50 = arith.constant 0.000000e+00 : f32
    %148 = vector.broadcast %cst_50 : f32 to vector<16x768xf32>
    %149 = arith.maximumf %147, %148 : vector<16x768xf32>
    %150 = arith.truncf %149 : vector<16x768xf32> to vector<16x768xbf16>
    %c0_51 = arith.constant 0 : index
    %c0_52 = arith.constant 0 : index
    %151 = vector.load %arg11[%c0_51, %c0_52] : memref<768x192xbf16, #tpu.memory_space<vmem>>, vector<768x192xbf16>
    %cst_53 = arith.constant dense<0.000000e+00> : vector<16x192xf32>
    %152 = tpu.matmul %150, %151, %cst_53 {dimension_numbers = #tpu.dot_dimension_numbers<[1], [0], [0], [1], [0, 0, 1, 1], [], []>} : vector<16x768xbf16>, vector<768x192xbf16>, vector<16x192xf32> -> vector<16x192xf32>
    %c0_54 = arith.constant 0 : index
    %c0_55 = arith.constant 0 : index
    %153 = vector.load %arg12[%c0_54, %c0_55] : memref<1x192xf32, #tpu.memory_space<vmem>>, vector<1x192xf32>
    %154 = vector.broadcast %153 : vector<1x192xf32> to vector<16x192xf32>
    %155 = arith.addf %152, %154 : vector<16x192xf32>
    %156 = arith.addf %117, %155 : vector<16x192xf32>
    %157 = vector.shape_cast %156 : vector<16x192xf32> to vector<2x8x192xf32>
    %c0_56 = arith.constant 0 : index
    %c0_57 = arith.constant 0 : index
    %c0_58 = arith.constant 0 : index
    %158 = vector.load %arg13[%c0_56, %c0_57, %c0_58] : memref<2x8x192xf32, #tpu.memory_space<vmem>>, vector<2x8x192xf32>
    tpu.vector_store %arg13[%c0_56, %c0_57, %c0_58], %157 {strides = array<i32>} : memref<2x8x192xf32, #tpu.memory_space<vmem>>, vector<2x8x192xf32>,
    return
  }
  func.func @transform_0(%arg0: i32) -> (i32, i32, i32) {
    %c0_i32 = arith.constant 0 : i32
    %c0_i32_0 = arith.constant 0 : i32
    %c0_i32_1 = arith.constant 0 : i32
    return %arg0, %c0_i32, %c0_i32_0 : i32, i32, i32
  }
  func.func @transform_1(%arg0: i32) -> (i32, i32) {
    %c0_i32 = arith.constant 0 : i32
    %c0_i32_0 = arith.constant 0 : i32
    %c0_i32_1 = arith.constant 0 : i32
    return %c0_i32, %c0_i32_0 : i32, i32
  }
  func.func @transform_2(%arg0: i32) -> (i32, i32) {
    %c0_i32 = arith.constant 0 : i32
    %c0_i32_0 = arith.constant 0 : i32
    %c0_i32_1 = arith.constant 0 : i32
    return %c0_i32, %c0_i32_0 : i32, i32
  }
  func.func @transform_3(%arg0: i32) -> (i32, i32) {
    %c0_i32 = arith.constant 0 : i32
    %c0_i32_0 = arith.constant 0 : i32
    %c0_i32_1 = arith.constant 0 : i32
    return %c0_i32, %c0_i32_0 : i32, i32
  }
  func.func @transform_4(%arg0: i32) -> (i32, i32) {
    %c0_i32 = arith.constant 0 : i32
    %c0_i32_0 = arith.constant 0 : i32
    %c0_i32_1 = arith.constant 0 : i32
    return %c0_i32, %c0_i32_0 : i32, i32
  }
  func.func @transform_5(%arg0: i32) -> (i32, i32) {
    %c0_i32 = arith.constant 0 : i32
    %c0_i32_0 = arith.constant 0 : i32
    %c0_i32_1 = arith.constant 0 : i32
    return %c0_i32, %c0_i32_0 : i32, i32
  }
  func.func @transform_6(%arg0: i32) -> (i32, i32) {
    %c0_i32 = arith.constant 0 : i32
    %c0_i32_0 = arith.constant 0 : i32
    %c0_i32_1 = arith.constant 0 : i32
    return %c0_i32, %c0_i32_0 : i32, i32
  }
  func.func @transform_7(%arg0: i32) -> (i32, i32) {
    %c0_i32 = arith.constant 0 : i32
    %c0_i32_0 = arith.constant 0 : i32
    %c0_i32_1 = arith.constant 0 : i32
    return %c0_i32, %c0_i32_0 : i32, i32
  }
  func.func @transform_8(%arg0: i32) -> (i32, i32) {
    %c0_i32 = arith.constant 0 : i32
    %c0_i32_0 = arith.constant 0 : i32
    %c0_i32_1 = arith.constant 0 : i32
    return %c0_i32, %c0_i32_0 : i32, i32
  }
  func.func @transform_9(%arg0: i32) -> (i32, i32) {
    %c0_i32 = arith.constant 0 : i32
    %c0_i32_0 = arith.constant 0 : i32
    %c0_i32_1 = arith.constant 0 : i32
    return %c0_i32, %c0_i32_0 : i32, i32
  }
  func.func @transform_10(%arg0: i32) -> (i32, i32) {
    %c0_i32 = arith.constant 0 : i32
    %c0_i32_0 = arith.constant 0 : i32
    %c0_i32_1 = arith.constant 0 : i32
    return %c0_i32, %c0_i32_0 : i32, i32
  }
  func.func @transform_11(%arg0: i32) -> (i32, i32) {
    %c0_i32 = arith.constant 0 : i32
    %c0_i32_0 = arith.constant 0 : i32
    %c0_i32_1 = arith.constant 0 : i32
    return %c0_i32, %c0_i32_0 : i32, i32
  }
  func.func @transform_12(%arg0: i32) -> (i32, i32, i32) {
    %c0_i32 = arith.constant 0 : i32
    %c0_i32_0 = arith.constant 0 : i32
    %c0_i32_1 = arith.constant 0 : i32
    return %arg0, %c0_i32, %c0_i32_0 : i32, i32, i32
  }
}

</mosaic_0001>

<bundles_post_ra>
// kernel: tpu_custom_call.1
= control target key start
LH: loop header
LB: loop body
LE: loop exit
PB: predicated region body
PF: predicated region fallthrough
CT: control target
= control target key end

     0   :  { %17 = vsyncpa [#allocation3], 0  ;;  %s6116_s0 = inlined_call_operand.vmem [shape: f32[2,8,192], index: 0, kind: input, shape index: {}]   ;;  %s6117_s1 = inlined_call_operand.vmem [shape: f32[1,192], index: 1, kind: input, shape index: {}]   ;;  %s6118_s2 = inlined_call_operand.vmem [shape: f32[1,192], index: 2, kind: input, shape index: {}]   ;;  %s6119_s3 = inlined_call_operand.vmem [shape: bf16[192,1152], index: 3, kind: input, shape index: {}]   ;;  %s6120_s4 = inlined_call_operand.vmem [shape: bf16[384,192], index: 4, kind: input, shape index: {}]   ;;  %s6121_s5 = inlined_call_operand.hbm [shape: f32[1,192], index: 5, kind: input, shape index: {}]   ;;  %s6122_s6 = inlined_call_operand.hbm [shape: f32[1,192], index: 6, kind: input, shape index: {}]   ;;  %s6123_s7 = inlined_call_operand.hbm [shape: f32[1,192], index: 7, kind: input, shape index: {}]   ;;  %s6124_s8 = inlined_call_operand.vmem [shape: bf16[192,768], index: 8, kind: input, shape index: {}]   ;;  %s6125_s9 = inlined_call_operand.hbm [shape: f32[1,768], index: 9, kind: input, shape index: {}]   ;;  %s6126_s10 = inlined_call_operand.vmem [shape: bf16[768,192], index: 10, kind: input, shape index: {}]   ;;  %s6127_s11 = inlined_call_operand.hbm [shape: f32[1,192], index: 11, kind: input, shape index: {}]   ;;  %s6128_s12 = inlined_call_operand.hbm [shape: f32[2,8,192], index: 12, kind: output, shape index: {}]  }
   0x1   :  { %18 = vsyncpa [#allocation6], 0 }
   0x2   :  { %19 = vsyncpa [#allocation9], 0 }
   0x3   :  { %20 = vsyncpa [#allocation4], 0  ;;  %s4681_s21 = smov [#allocation5]   ;;  %s4682_s23 = smov [#allocation8]  }
   0x4   :  { %s47_s22 = sshll.u32 %s4681_s21, 4  ;;  %s69_s24 = sshll.u32 %s4682_s23, 4  ;;  %s48_s22 = int_to_ptr.vmem [resolvable:$true] %s47_s22  ;;  %s70_s24 = int_to_ptr.vmem [resolvable:$true] %s69_s24 }
   0x5   :  { %s4541_s27 = scalar_lea.hbm %s6122_s6, 32 }
   0x6   :  { %p4542_p0 = scmp.ne.s32.totalorder %s6122_s6, %s4541_s27  ;;  %p4545_p1 = scmp.lt.u32.totalorder %s4541_s27, %s6122_s6 }
   0x8   :  { %p4547_p2 = pnand %p4545_p1, %p4542_p0 }
   0xa   :  { %4550 = shalt.err (!%p4547_p2)
}
   0xb   :  { %s4551_s14 = scalar_lea.vmem %s48_s22, 32  ;;  %p4556_p4 = scmp.lt.s32.totalorder %s48_s22, %s48_s22 }
   0xc   :  { %p4552_p3 = scmp.ne.s32.totalorder %s48_s22, %s4551_s14  ;;  %p4557_p5 = scmp.lt.s32.totalorder %s4551_s14, %s4551_s14 }
   0xe   :  { %p4558_p6 = por %p4557_p5, %p4556_p4 }
  0x10   :  { %p4559_p7 = pnand %p4558_p6, %p4552_p3 }
  0x12   :  { %4562 = shalt.err (!%p4559_p7)
}
  0x13   :  { %50 = dma.hbm_to_vmem [thread:$0]  %s6122_s6, 32, %s48_s22, [#allocation6]  }
  0x14   :  { %s4563_s19 = scalar_lea.hbm %s6125_s9, 96 }
  0x15   :  { %p4564_p8 = scmp.ne.s32.totalorder %s6125_s9, %s4563_s19  ;;  %p4567_p9 = scmp.lt.u32.totalorder %s4563_s19, %s6125_s9 }
  0x17   :  { %p4569_p10 = pnand %p4567_p9, %p4564_p8 }
  0x19   :  { %4572 = shalt.err (!%p4569_p10)
}
  0x1a   :  { %s4573_s26 = scalar_lea.vmem %s70_s24, 96  ;;  %p4578_p12 = scmp.lt.s32.totalorder %s70_s24, %s70_s24 }
  0x1b   :  { %p4574_p11 = scmp.ne.s32.totalorder %s70_s24, %s4573_s26  ;;  %p4579_p13 = scmp.lt.s32.totalorder %s4573_s26, %s4573_s26 }
  0x1d   :  { %p4580_p0 = por %p4579_p13, %p4578_p12 }
  0x1f   :  { %p4581_p1 = pnand %p4580_p0, %p4574_p11 }
  0x21   :  { %4584 = shalt.err (!%p4581_p1)
}
  0x22   :  { %72 = dma.hbm_to_vmem [thread:$0]  %s6125_s9, 96, %s70_s24, [#allocation9]  }
  0x23   :  { %s4683_s27 = smov [#allocation2]   ;;  %s4684_s29 = smov [#allocation7]  }
  0x24   :  { %s37_s28 = sshll.u32 %s4683_s27, 4  ;;  %s57_s30 = sshll.u32 %s4684_s29, 4  ;;  %s38_s28 = int_to_ptr.vmem [resolvable:$true] %s37_s28  ;;  %s58_s30 = int_to_ptr.vmem [resolvable:$true] %s57_s30 }
  0x25   :  { %s4585_s15 = scalar_lea.hbm %s6121_s5, 32 }
  0x26   :  { %p4586_p2 = scmp.ne.s32.totalorder %s6121_s5, %s4585_s15  ;;  %p4589_p3 = scmp.lt.u32.totalorder %s4585_s15, %s6121_s5 }
  0x28   :  { %p4591_p4 = pnand %p4589_p3, %p4586_p2 }
  0x2a   :  { %4594 = shalt.err (!%p4591_p4)
}
  0x2b   :  { %s4595_s9 = scalar_lea.vmem %s38_s28, 32  ;;  %p4600_p6 = scmp.lt.s32.totalorder %s38_s28, %s38_s28 }
  0x2c   :  { %p4596_p5 = scmp.ne.s32.totalorder %s38_s28, %s4595_s9  ;;  %p4601_p7 = scmp.lt.s32.totalorder %s4595_s9, %s4595_s9 }
  0x2e   :  { %p4602_p8 = por %p4601_p7, %p4600_p6 }
  0x30   :  { %p4603_p9 = pnand %p4602_p8, %p4596_p5 }
  0x32   :  { %4606 = shalt.err (!%p4603_p9)
}
  0x33   :  { %40 = dma.hbm_to_vmem [thread:$0]  %s6121_s5, 32, %s38_s28, [#allocation3]  }
  0x34   :  { %s4607_s25 = scalar_lea.hbm %s6123_s7, 32 }
  0x35   :  { %p4608_p10 = scmp.ne.s32.totalorder %s6123_s7, %s4607_s25  ;;  %p4611_p11 = scmp.lt.u32.totalorder %s4607_s25, %s6123_s7 }
  0x37   :  { %p4613_p12 = pnand %p4611_p11, %p4608_p10 }
  0x39   :  { %4616 = shalt.err (!%p4613_p12)
}
  0x3a   :  { %s4617_s29 = scalar_lea.vmem %s58_s30, 32  ;;  %p4622_p0 = scmp.lt.s32.totalorder %s58_s30, %s58_s30 }
  0x3b   :  { %p4618_p13 = scmp.ne.s32.totalorder %s58_s30, %s4617_s29  ;;  %p4623_p1 = scmp.lt.s32.totalorder %s4617_s29, %s4617_s29 }
  0x3d   :  { %p4624_p2 = por %p4623_p1, %p4622_p0 }
  0x3f   :  { %p4625_p3 = pnand %p4624_p2, %p4618_p13 }
  0x41   :  { %4628 = shalt.err (!%p4625_p3)
}
  0x42   :  { %60 = dma.hbm_to_vmem [thread:$0]  %s6123_s7, 32, %s58_s30, [#allocation6]  }
  0x43   :  { %s4685_s13 = smov [#allocation10]   ;;  %s4629_s17 = scalar_lea.hbm %s6127_s11, 32 }
  0x44   :  { %s81_s14 = sshll.u32 %s4685_s13, 4  ;;  %p4630_p4 = scmp.ne.s32.totalorder %s6127_s11, %s4629_s17  ;;  %s82_s14 = int_to_ptr.vmem [resolvable:$true] %s81_s14 }
  0x45   :  { %p4633_p5 = scmp.lt.u32.totalorder %s4629_s17, %s6127_s11 }
  0x47   :  { %p4635_p6 = pnand %p4633_p5, %p4630_p4 }
  0x49   :  { %4638 = shalt.err (!%p4635_p6)
}
  0x4a   :  { %s4639_s20 = scalar_lea.vmem %s82_s14, 32  ;;  %p4644_p8 = scmp.lt.s32.totalorder %s82_s14, %s82_s14 }
  0x4b   :  { %p4640_p7 = scmp.ne.s32.totalorder %s82_s14, %s4639_s20  ;;  %p4645_p9 = scmp.lt.s32.totalorder %s4639_s20, %s4639_s20 }
  0x4d   :  { %p4646_p10 = por %p4645_p9, %p4644_p8 }
  0x4f   :  { %p4647_p11 = pnand %p4646_p10, %p4640_p7 }
  0x51   :  { %4650 = shalt.err (!%p4647_p11)
}
  0x52   :  { %84 = dma.hbm_to_vmem [thread:$0]  %s6127_s11, 32, %s82_s14, [#allocation9]  }
  0x53   :  { %4673 = dma.done.wait [#allocation3], 32  }
  0x54   :  { %4674 = vsyncadd [#allocation3], 4294967264 }
  0x55   :  { %4675 = dma.done.wait [#allocation6], 64  }
  0x56   :  { %4676 = vsyncadd [#allocation6], 4294967232 }
  0x57   :  { %4677 = dma.done.wait [#allocation9], 128  }
  0x58   :  { %4678 = vsyncadd [#allocation9], 4294967168  ;;  %vm107_vm0 = vcmask 523264   ;;  %v101_v0 = vld [vmem:[%s6116_s0] sm:$0xff]  ;;  %v102_v1 = vld [vmem:[%s6116_s0 + $0x8] sm:$0xff]  ;;  %vm4688_vm1 = vmmov 0  }
  0x59   :  { %v103_v2 = vld [vmem:[%s6116_s0 + $0x10] sm:$0xff]  ;;  %v108_v3 = vsel %vm107_vm0, %v102_v1, 0.0  ;;  %v104_v4 = vld [vmem:[%s6116_s0 + $0x18] sm:$0xff]  ;;  %v4025_v8 = vld [vmem:[%s6119_s3 + $0x4] ss:$36 sps:$4 sm:$0xff]   ;;  %vm1197_vm2 = vcmask 1043456  }
  0x5a   :  { %v109_v5 = vadd.f32 %v108_v3, %v101_v0  ;;  %v112_v6 = vsel %vm107_vm0, %v104_v4, 0.0  ;;  %v4027_v9 = vld [vmem:[%s6119_s3 + $0xc] ss:$36 sps:$4 sm:$0xff]   ;;  %v4029_v10 = vld [vmem:[%s6119_s3] ss:$36 sps:$4 sm:$0xff]   ;;  %852 = vmatprep.subr.bf16.mxu0 %v4025_v8  ;;  %vm1169_vm4 = vcmask 64512  }
  0x5b   :  { %v113_v7 = vadd.f32 %v112_v6, %v103_v2  ;;  %v4030_v11 = vld [vmem:[%s6119_s3 + $0x8] ss:$36 sps:$4 sm:$0xff]   ;;  %v4033_v13 = vld [vmem:[%s6119_s3 + $0x54] ss:$36 sps:$4 sm:$0xff]   ;;  %895 = vmatprep.subr.bf16.mxu1 %v4027_v9  ;;  %853 = vmatpush1.bf16.msra.mxu0 %v4029_v10  ;;  %v4039_v17 = vld [vmem:[%s6119_s3 + $0x9c] ss:$36 sps:$4 sm:$0xff]  }
  0x5c   :  { %110 = vadd.xlane.f32.xlu0 %v109_v5  ;;  %v4031_v12 = vld [vmem:[%s6119_s3 + $0x4c] ss:$36 sps:$4 sm:$0xff]   ;;  %896 = vmatpush1.bf16.msra.mxu1 %v4030_v11  ;;  %v4037_v16 = vld [vmem:[%s6119_s3 + $0x94] ss:$36 sps:$4 sm:$0xff]   ;;  %v4043_v20 = vld [vmem:[%s6119_s3 + $0xdc] ss:$36 sps:$4 sm:$0xff]  }
  0x5d   :  { %v4035_v14 = vld [vmem:[%s6119_s3 + $0x48] ss:$36 sps:$4 sm:$0xff]   ;;  %v4036_v15 = vld [vmem:[%s6119_s3 + $0x50] ss:$36 sps:$4 sm:$0xff]   ;;  %854 = vmatprep.subr.bf16.mxu0 %v4031_v12  ;;  %897 = vmatprep.subr.bf16.mxu1 %v4033_v13  ;;  %v4042_v19 = vld [vmem:[%s6119_s3 + $0x98] ss:$36 sps:$4 sm:$0xff]   ;;  %v146_v13 = vlaneseq }
  0x5e   :  { %v4041_v18 = vld [vmem:[%s6119_s3 + $0x90] ss:$36 sps:$4 sm:$0xff]   ;;  %v4045_v21 = vld [vmem:[%s6119_s3 + $0xe4] ss:$36 sps:$4 sm:$0xff]   ;;  %v4047_v22 = vld [vmem:[%s6119_s3 + $0xd8] ss:$36 sps:$4 sm:$0xff]  }
  0x5f   :  { %855 = vmatpush1.bf16.msra.mxu0 %v4035_v14  ;;  %v4048_v23 = vld [vmem:[%s6119_s3 + $0xe0] ss:$36 sps:$4 sm:$0xff]   ;;  %v4051_v25 = vld [vmem:[%s6119_s3 + $0x12c] ss:$36 sps:$4 sm:$0xff]   ;;  %v4057_v29 = vld [vmem:[%s6119_s3 + $0x174] ss:$36 sps:$4 sm:$0xff]  }
  0x60   :  { %114 = vadd.xlane.f32.xlu0 %v113_v7  ;;  %898 = vmatpush1.bf16.msra.mxu1 %v4036_v15  ;;  %v4049_v24 = vld [vmem:[%s6119_s3 + $0x124] ss:$36 sps:$4 sm:$0xff]   ;;  %v4055_v28 = vld [vmem:[%s6119_s3 + $0x16c] ss:$36 sps:$4 sm:$0xff]   ;;  %v4061_v48 = vld [vmem:[%s6119_s3 + $0x1b4] ss:$36 sps:$4 sm:$0xff]  }
  0x61   :  { %856 = vmatprep.subr.bf16.mxu0 %v4037_v16  ;;  %899 = vmatprep.subr.bf16.mxu1 %v4039_v17  ;;  %v4053_v26 = vld [vmem:[%s6119_s3 + $0x120] ss:$36 sps:$4 sm:$0xff]   ;;  %v4054_v27 = vld [vmem:[%s6119_s3 + $0x128] ss:$36 sps:$4 sm:$0xff]   ;;  %v4060_v47 = vld [vmem:[%s6119_s3 + $0x170] ss:$36 sps:$4 sm:$0xff]  }
  0x62   :  { %v4059_v46 = vld [vmem:[%s6119_s3 + $0x168] ss:$36 sps:$4 sm:$0xff]   ;;  %v4063_v49 = vld [vmem:[%s6119_s3 + $0x1bc] ss:$36 sps:$4 sm:$0xff]   ;;  %v4065_v50 = vld [vmem:[%s6119_s3 + $0x1b0] ss:$36 sps:$4 sm:$0xff]  }
  0x63   :  { %857 = vmatpush1.bf16.msra.mxu0 %v4041_v18  ;;  %v4066_v51 = vld [vmem:[%s6119_s3 + $0x1b8] ss:$36 sps:$4 sm:$0xff]   ;;  %v4069_v53 = vld [vmem:[%s6119_s3 + $0x204] ss:$36 sps:$4 sm:$0xff]   ;;  %v4075_v57 = vld [vmem:[%s6119_s3 + $0x24c] ss:$36 sps:$4 sm:$0xff]  }
  0x64   :  { %900 = vmatpush1.bf16.msra.mxu1 %v4042_v19  ;;  %858 = vmatprep.subr.bf16.mxu0 %v4043_v20  ;;  %v4067_v52 = vld [vmem:[%s6119_s3 + $0x1fc] ss:$36 sps:$4 sm:$0xff]   ;;  %v4073_v56 = vld [vmem:[%s6119_s3 + $0x244] ss:$36 sps:$4 sm:$0xff]   ;;  %v4079_v60 = vld [vmem:[%s6119_s3 + $0x28c] ss:$36 sps:$4 sm:$0xff]  }
  0x65   :  { %901 = vmatprep.subr.bf16.mxu1 %v4045_v21  ;;  %v4071_v54 = vld [vmem:[%s6119_s3 + $0x1f8] ss:$36 sps:$4 sm:$0xff]   ;;  %v4072_v55 = vld [vmem:[%s6119_s3 + $0x200] ss:$36 sps:$4 sm:$0xff]   ;;  %v4078_v59 = vld [vmem:[%s6119_s3 + $0x248] ss:$36 sps:$4 sm:$0xff]  }
  0x66   :  { %v4077_v58 = vld [vmem:[%s6119_s3 + $0x240] ss:$36 sps:$4 sm:$0xff]   ;;  %v4081_v61 = vld [vmem:[%s6119_s3 + $0x294] ss:$36 sps:$4 sm:$0xff]   ;;  %v4083_v62 = vld [vmem:[%s6119_s3 + $0x288] ss:$36 sps:$4 sm:$0xff]  }
  0x67   :  { %859 = vmatpush1.bf16.msra.mxu0 %v4047_v22  ;;  %v4084_v63 = vld [vmem:[%s6119_s3 + $0x290] ss:$36 sps:$4 sm:$0xff]   ;;  %v4090_v3 = vld [vmem:[%s6119_s3 + $0x2d8] ss:$36 sps:$4 sm:$0xff]   ;;  %v4093_v5 = vld [vmem:[%s6119_s3 + $0x324] ss:$36 sps:$4 sm:$0xff]  }
  0x68   :  { %902 = vmatpush1.bf16.msra.mxu1 %v4048_v23  ;;  %860 = vmatprep.subr.bf16.mxu0 %v4049_v24  ;;  %v4095_v6 = vld [vmem:[%s6119_s3 + $0x318] ss:$36 sps:$4 sm:$0xff]   ;;  %v4096_v7 = vld [vmem:[%s6119_s3 + $0x320] ss:$36 sps:$4 sm:$0xff]   ;;  %v5001_v17 = vshrl.u32 %v146_v13, 7 }
  0x69   :  { %903 = vmatprep.subr.bf16.mxu1 %v4051_v25  ;;  %v4099_v8 = vld [vmem:[%s6119_s3 + $0x14] ss:$36 sps:$4 sm:$0xff]   ;;  %v4102_v9 = vld [vmem:[%s6119_s3 + $0x1c] ss:$36 sps:$4 sm:$0xff]  }
  0x6a   :  { %v5004_v18 = vsub.s32 0, %v5001_v17  ;;  %v5007_v19 = vsub.s32 1, %v5001_v17  ;;  %v105_v20 = vld [vmem:[%s6117_s1] sm:$0x3] }
  0x6b   :  { %861 = vmatpush1.bf16.msra.mxu0 %v4053_v26  ;;  %v106_v26 = vld [vmem:[%s6118_s2] sm:$0x3] }
  0x6c   :  { %904 = vmatpush1.bf16.msra.mxu1 %v4054_v27  ;;  %862 = vmatprep.subr.bf16.mxu0 %v4055_v28  ;;  %v149_v22 = vrot.slane %v105_v20, %v5004_v18  ;;  %v153_v23 = vrot.slane %v105_v20, %v5007_v19  ;;  %v168_v28 = vrot.slane %v106_v26, %v5007_v19  ;;  %v4159_v20 = vld [vmem:[%s6119_s3 + $0x2e4] ss:$36 sps:$4 sm:$0xff]  }
  0x6d   :  { %905 = vmatprep.subr.bf16.mxu1 %v4057_v29  ;;  %v164_v29 = vrot.slane %v106_v26, %v5004_v18  ;;  %v4163_v26 = vld [vmem:[%s6119_s3 + $0x328] ss:$36 sps:$4 sm:$0xff]  }
  0x6f   :  { %863 = vmatpush1.bf16.msra.mxu0 %v4059_v46  ;;  %v4103_v46 = vld [vmem:[%s6119_s3 + $0x58] ss:$36 sps:$4 sm:$0xff]  }
  0x70   :  { %906 = vmatpush1.bf16.msra.mxu1 %v4060_v47  ;;  %864 = vmatprep.subr.bf16.mxu0 %v4061_v48  ;;  %v4106_v47 = vld [vmem:[%s6119_s3 + $0x60] ss:$36 sps:$4 sm:$0xff]  }
  0x71   :  { %907 = vmatprep.subr.bf16.mxu1 %v4063_v49  ;;  %v4111_v48 = vld [vmem:[%s6119_s3 + $0xa4] ss:$36 sps:$4 sm:$0xff]   ;;  %v4114_v49 = vld [vmem:[%s6119_s3 + $0xac] ss:$36 sps:$4 sm:$0xff]  }
  0x73   :  { %865 = vmatpush1.bf16.msra.mxu0 %v4065_v50  ;;  %v4109_v50 = vld [vmem:[%s6119_s3 + $0xa0] ss:$36 sps:$4 sm:$0xff]  }
  0x74   :  { %908 = vmatpush1.bf16.msra.mxu1 %v4066_v51  ;;  %866 = vmatprep.subr.bf16.mxu0 %v4067_v52  ;;  %v4112_v51 = vld [vmem:[%s6119_s3 + $0xa8] ss:$36 sps:$4 sm:$0xff]  }
  0x75   :  { %909 = vmatprep.subr.bf16.mxu1 %v4069_v53  ;;  %v4117_v52 = vld [vmem:[%s6119_s3 + $0xec] ss:$36 sps:$4 sm:$0xff]   ;;  %v4120_v53 = vld [vmem:[%s6119_s3 + $0xf4] ss:$36 sps:$4 sm:$0xff]  }
  0x77   :  { %867 = vmatpush1.bf16.msra.mxu0 %v4071_v54  ;;  %v4115_v54 = vld [vmem:[%s6119_s3 + $0xe8] ss:$36 sps:$4 sm:$0xff]  }
  0x78   :  { %910 = vmatpush1.bf16.msra.mxu1 %v4072_v55  ;;  %868 = vmatprep.subr.bf16.mxu0 %v4073_v56  ;;  %v4118_v55 = vld [vmem:[%s6119_s3 + $0xf0] ss:$36 sps:$4 sm:$0xff]  }
  0x79   :  { %911 = vmatprep.subr.bf16.mxu1 %v4075_v57  ;;  %v4123_v56 = vld [vmem:[%s6119_s3 + $0x134] ss:$36 sps:$4 sm:$0xff]   ;;  %v4126_v57 = vld [vmem:[%s6119_s3 + $0x13c] ss:$36 sps:$4 sm:$0xff]  }
  0x7b   :  { %869 = vmatpush1.bf16.msra.mxu0 %v4077_v58  ;;  %v4121_v58 = vld [vmem:[%s6119_s3 + $0x130] ss:$36 sps:$4 sm:$0xff]  }
  0x7c   :  { %912 = vmatpush1.bf16.msra.mxu1 %v4078_v59  ;;  %870 = vmatprep.subr.bf16.mxu0 %v4079_v60  ;;  %v4124_v59 = vld [vmem:[%s6119_s3 + $0x138] ss:$36 sps:$4 sm:$0xff]  }
  0x7d   :  { %913 = vmatprep.subr.bf16.mxu1 %v4081_v61  ;;  %v4129_v60 = vld [vmem:[%s6119_s3 + $0x17c] ss:$36 sps:$4 sm:$0xff]   ;;  %v4132_v61 = vld [vmem:[%s6119_s3 + $0x184] ss:$36 sps:$4 sm:$0xff]  }
  0x7f   :  { %871 = vmatpush1.bf16.msra.mxu0 %v4083_v62  ;;  %v4127_v62 = vld [vmem:[%s6119_s3 + $0x178] ss:$36 sps:$4 sm:$0xff]  }
  0x80   :  { %914 = vmatpush1.bf16.msra.mxu1 %v4084_v63  ;;  %v4130_v63 = vld [vmem:[%s6119_s3 + $0x180] ss:$36 sps:$4 sm:$0xff]  }
  0xe9   :  { %v111_v30 = vpop.xlane.xlu0 %110 }
  0xea   :  { %v117_v31 = vmul.f32 0.0052083335, %v111_v30 }
  0xec   :  { %v4898_v32 = vsub.f32 %v101_v0, %v117_v31  ;;  %v4900_v33 = vsub.f32 %v102_v1, %v117_v31  ;;  %v4085_v0 = vld [vmem:[%s6119_s3 + $0x2d4] ss:$36 sps:$4 sm:$0xff]   ;;  %v4087_v1 = vld [vmem:[%s6119_s3 + $0x2dc] ss:$36 sps:$4 sm:$0xff]  }
  0xed   :  { %v115_v34 = vpop.xlane.xlu0 %114  ;;  %872 = vmatprep.subr.bf16.mxu0 %v4085_v0  ;;  %915 = vmatprep.subr.bf16.mxu1 %v4087_v1  ;;  %v4135_v0 = vld [vmem:[%s6119_s3 + $0x1c4] ss:$36 sps:$4 sm:$0xff]   ;;  %v4138_v1 = vld [vmem:[%s6119_s3 + $0x1cc] ss:$36 sps:$4 sm:$0xff]  }
  0xee   :  { %v118_v35 = vmul.f32 0.0052083335, %v115_v34  ;;  %v123_v36 = vmul.f32 %v4898_v32, %v4898_v32  ;;  %v124_v37 = vmul.f32 %v4900_v33, %v4900_v33  ;;  %916 = vmatpush1.bf16.msra.mxu1 %v4090_v3  ;;  %v4136_v3 = vld [vmem:[%s6119_s3 + $0x1c8] ss:$36 sps:$4 sm:$0xff]  }
  0xef   :  { %917 = vmatprep.subr.bf16.mxu1 %v4093_v5  ;;  %v4144_v5 = vld [vmem:[%s6119_s3 + $0x214] ss:$36 sps:$4 sm:$0xff]  }
  0xf0   :  { %v4906_v38 = vsub.f32 %v103_v2, %v118_v35  ;;  %v4908_v39 = vsub.f32 %v104_v4, %v118_v35  ;;  %v127_v40 = vsel %vm107_vm0, %v124_v37, 0.0  ;;  %v4089_v2 = vld [vmem:[%s6119_s3 + $0x2d0] ss:$36 sps:$4 sm:$0xff]   ;;  %v4091_v4 = vld [vmem:[%s6119_s3 + $0x31c] ss:$36 sps:$4 sm:$0xff]  }
  0xf1   :  { %v128_v41 = vadd.f32 %v127_v40, %v123_v36  ;;  %873 = vmatpush1.bf16.msra.mxu0 %v4089_v2  ;;  %v4133_v2 = vld [vmem:[%s6119_s3 + $0x1c0] ss:$36 sps:$4 sm:$0xff]  }
  0xf2   :  { %v125_v42 = vmul.f32 %v4906_v38, %v4906_v38  ;;  %v126_v43 = vmul.f32 %v4908_v39, %v4908_v39  ;;  %874 = vmatprep.subr.bf16.mxu0 %v4091_v4  ;;  %918 = vmatpush1.bf16.msra.mxu1 %v4096_v7  ;;  %v4141_v4 = vld [vmem:[%s6119_s3 + $0x20c] ss:$36 sps:$4 sm:$0xff]  }
  0xf3   :  { %129 = vadd.xlane.f32.xlu1 %v128_v41  ;;  %981 = vmatprep.subr.bf16.mxu1 %v4102_v9  ;;  %v4142_v7 = vld [vmem:[%s6119_s3 + $0x210] ss:$36 sps:$4 sm:$0xff]   ;;  %v4150_v9 = vld [vmem:[%s6119_s3 + $0x25c] ss:$36 sps:$4 sm:$0xff]  }
  0xf4   :  { %v131_v44 = vsel %vm107_vm0, %v126_v43, 0.0  ;;  %v4097_v43 = vld [vmem:[%s6119_s3 + $0x10] ss:$36 sps:$4 sm:$0xff]  }
  0xf5   :  { %v132_v45 = vadd.f32 %v131_v44, %v125_v42  ;;  %875 = vmatpush1.bf16.msra.mxu0 %v4095_v6  ;;  %v4100_v44 = vld [vmem:[%s6119_s3 + $0x18] ss:$36 sps:$4 sm:$0xff]   ;;  %v4139_v6 = vld [vmem:[%s6119_s3 + $0x208] ss:$36 sps:$4 sm:$0xff]  }
  0xf6   :  { %938 = vmatprep.subr.bf16.mxu0 %v4099_v8  ;;  %v4147_v8 = vld [vmem:[%s6119_s3 + $0x254] ss:$36 sps:$4 sm:$0xff]  }
  0xf7   :  { %133 = vadd.xlane.f32.xlu1 %v132_v45 }
 0x180   :  { %v130_v10 = vpop.xlane.xlu1 %129 }
 0x181   :  { %v135_v11 = vmul.f32 0.0052083335, %v130_v10  ;;  %v4145_v10 = vld [vmem:[%s6119_s3 + $0x250] ss:$36 sps:$4 sm:$0xff]  }
 0x183   :  { %v137_v12 = vadd.f32 1e-05, %v135_v11  ;;  %v4148_v11 = vld [vmem:[%s6119_s3 + $0x258] ss:$36 sps:$4 sm:$0xff]  }
 0x184   :  { %v134_v14 = vpop.xlane.xlu1 %133 }
 0x185   :  { %4505 = vrsqrt.f32 %v137_v12  ;;  %v136_v15 = vmul.f32 0.0052083335, %v134_v14  ;;  %v4153_v12 = vld [vmem:[%s6119_s3 + $0x29c] ss:$36 sps:$4 sm:$0xff]   ;;  %v4156_v14 = vld [vmem:[%s6119_s3 + $0x2a4] ss:$36 sps:$4 sm:$0xff]  }
 0x187   :  { %v138_v16 = vadd.f32 1e-05, %v136_v15  ;;  %v4151_v15 = vld [vmem:[%s6119_s3 + $0x298] ss:$36 sps:$4 sm:$0xff]  }
 0x189   :  { %4507 = vrsqrt.f32 %v138_v16  ;;  %v4154_v16 = vld [vmem:[%s6119_s3 + $0x2a0] ss:$36 sps:$4 sm:$0xff]  }
 0x18f   :  { %v4506_v21 = vpop.eup %4505 }
 0x190   :  { %v141_v24 = vmul.f32 %v4506_v21, %v4898_v32  ;;  %v142_v25 = vmul.f32 %v4506_v21, %v4900_v33  ;;  %v4162_v21 = vld [vmem:[%s6119_s3 + $0x2ec] ss:$36 sps:$4 sm:$0xff]  }
 0x192   :  { %v156_v30 = vmul.f32 %v149_v22, %v141_v24  ;;  %v157_v31 = vmul.f32 %v153_v23, %v142_v25  ;;  %v4165_v24 = vld [vmem:[%s6119_s3 + $0x32c] ss:$36 sps:$4 sm:$0xff]   ;;  %v4168_v25 = vld [vmem:[%s6119_s3 + $0x334] ss:$36 sps:$4 sm:$0xff]  }
 0x193   :  { %v4508_v27 = vpop.eup %4507 }
 0x194   :  { %v143_v34 = vmul.f32 %v4508_v27, %v4906_v38  ;;  %v144_v35 = vmul.f32 %v4508_v27, %v4908_v39  ;;  %v172_v32 = vadd.f32 %v168_v28, %v157_v31  ;;  %v171_v33 = vadd.f32 %v164_v29, %v156_v30  ;;  %v4105_v38 = vld [vmem:[%s6119_s3 + $0x5c] ss:$36 sps:$4 sm:$0xff]   ;;  %v4108_v39 = vld [vmem:[%s6119_s3 + $0x64] ss:$36 sps:$4 sm:$0xff]   ;;  %v4166_v27 = vld [vmem:[%s6119_s3 + $0x330] ss:$36 sps:$4 sm:$0xff]  }
 0x195   :  { %v4170_v30 = vld [vmem:[%s6119_s3 + $0x68] ss:$36 sps:$4 sm:$0xff]   ;;  %v4171_v31 = vld [vmem:[%s6119_s3 + $0xb0] ss:$36 sps:$4 sm:$0xff]  }
 0x196   :  { %v158_v36 = vmul.f32 %v149_v22, %v143_v34  ;;  %v159_v37 = vmul.f32 %v153_v23, %v144_v35  ;;  %v4157_v22 = vld [vmem:[%s6119_s3 + $0x2e0] ss:$36 sps:$4 sm:$0xff]   ;;  %v4160_v23 = vld [vmem:[%s6119_s3 + $0x2e8] ss:$36 sps:$4 sm:$0xff]   ;;  %v4172_v34 = vld [vmem:[%s6119_s3 + $0xf8] ss:$36 sps:$4 sm:$0xff]  }
 0x197   :  { %v4173_v35 = vld [vmem:[%s6119_s3 + $0x140] ss:$36 sps:$4 sm:$0xff]  }
 0x198   :  { %v174_v40 = vadd.f32 %v168_v28, %v159_v37  ;;  %v173_v41 = vadd.f32 %v164_v29, %v158_v36  ;;  %v4169_v28 = vld [vmem:[%s6119_s3 + $0x20] ss:$36 sps:$4 sm:$0xff]   ;;  %v4686_v29 = vmov 0   ;;  %v4174_v36 = vld [vmem:[%s6119_s3 + $0x188] ss:$36 sps:$4 sm:$0xff]  }
 0x199   :  { %v4175_v37 = vld [vmem:[%s6119_s3 + $0x1d0] ss:$36 sps:$4 sm:$0xff]  }
 0x19a   :  { %v5023_v42 = vpack.c.bf16 %v174_v40, %v172_v32  ;;  %v5031_v45 = vpack.c.bf16 %v173_v41, %v171_v33  ;;  %v4176_v32 = vld [vmem:[%s6119_s3 + $0x218] ss:$36 sps:$4 sm:$0xff]   ;;  %v4177_v40 = vld [vmem:[%s6119_s3 + $0x260] ss:$36 sps:$4 sm:$0xff]   ;;  %v4178_v33 = vld [vmem:[%s6119_s3 + $0x2a8] ss:$36 sps:$4 sm:$0xff]  }
 0x19b   :  { %v4179_v41 = vld [vmem:[%s6119_s3 + $0x2f0] ss:$36 sps:$4 sm:$0xff]  }
 0x19c   :  { %3663 = vmatprep.mubr.msk.bf16.mxu0 %vm107_vm0, %v5023_v42  ;;  %3664 = vmatprep.mubr.msk.bf16.mxu1 %vm107_vm0, %v5023_v42 }
 0x19d   :  { %885 = vmatmul.mubr.bf16.vlgmr.msra.gmra.mrb[0].mxu0 %v5031_v45  ;;  %928 = vmatmul.mubr.bf16.vlgmr.msra.gmra.mrb[0].mxu1 %v5031_v45 }
 0x19e   :  { %939 = vmatpush1.bf16.msra.mxu0 %v4097_v43  ;;  %982 = vmatpush1.bf16.msra.mxu1 %v4100_v44  ;;  %v4180_v43 = vld [vmem:[%s6119_s3 + $0x338] ss:$36 sps:$4 sm:$0xff]  }
 0x19f   :  { %3665 = vmatprep.mubr.msk.bf16.mxu0 %vm107_vm0, %v5023_v42  ;;  %3666 = vmatprep.mubr.msk.bf16.mxu1 %vm107_vm0, %v5023_v42 }
 0x1a0   :  { %940 = vmatprep.subr.bf16.mxu0 %v4105_v38  ;;  %983 = vmatprep.subr.bf16.mxu1 %v4108_v39 }
 0x1a2   :  { %941 = vmatpush1.bf16.msra.mxu0 %v4103_v46  ;;  %984 = vmatpush1.bf16.msra.mxu1 %v4106_v47 }
 0x1a3   :  { %942 = vmatprep.subr.bf16.mxu0 %v4111_v48  ;;  %985 = vmatprep.subr.bf16.mxu1 %v4114_v49 }
 0x1a6   :  { %943 = vmatpush1.bf16.msra.mxu0 %v4109_v50  ;;  %986 = vmatpush1.bf16.msra.mxu1 %v4112_v51 }
 0x1a7   :  { %944 = vmatprep.subr.bf16.mxu0 %v4117_v52  ;;  %987 = vmatprep.subr.bf16.mxu1 %v4120_v53 }
 0x1aa   :  { %945 = vmatpush1.bf16.msra.mxu0 %v4115_v54  ;;  %988 = vmatpush1.bf16.msra.mxu1 %v4118_v55 }
 0x1ab   :  { %946 = vmatprep.subr.bf16.mxu0 %v4123_v56  ;;  %989 = vmatprep.subr.bf16.mxu1 %v4126_v57 }
 0x1ae   :  { %947 = vmatpush1.bf16.msra.mxu0 %v4121_v58  ;;  %990 = vmatpush1.bf16.msra.mxu1 %v4124_v59 }
 0x1af   :  { %948 = vmatprep.subr.bf16.mxu0 %v4129_v60  ;;  %991 = vmatprep.subr.bf16.mxu1 %v4132_v61 }
 0x1b2   :  { %949 = vmatpush1.bf16.msra.mxu0 %v4127_v62  ;;  %992 = vmatpush1.bf16.msra.mxu1 %v4130_v63 }
 0x1b3   :  { %950 = vmatprep.subr.bf16.mxu0 %v4135_v0  ;;  %993 = vmatprep.subr.bf16.mxu1 %v4138_v1 }
 0x1b6   :  { %951 = vmatpush1.bf16.msra.mxu0 %v4133_v2  ;;  %994 = vmatpush1.bf16.msra.mxu1 %v4136_v3 }
 0x1b7   :  { %952 = vmatprep.subr.bf16.mxu0 %v4141_v4  ;;  %995 = vmatprep.subr.bf16.mxu1 %v4144_v5  ;;  %v1068_v4 = vand.u32 127, %v146_v13  ;;  %v4689_v5 = vmov -inf  }
 0x1b9   :  { %vm1069_vm3 = vcmp.le.s32.totalorder %v1068_v4, %v5001_v17 }
 0x1ba   :  { %953 = vmatpush1.bf16.msra.mxu0 %v4139_v6  ;;  %996 = vmatpush1.bf16.msra.mxu1 %v4142_v7  ;;  %v5268_v6 = vsel %vm1069_vm3, 0.0, %v4689_v5 }
 0x1bb   :  { %954 = vmatprep.subr.bf16.mxu0 %v4147_v8  ;;  %997 = vmatprep.subr.bf16.mxu1 %v4150_v9 }
 0x1be   :  { %955 = vmatpush1.bf16.msra.mxu0 %v4145_v10  ;;  %998 = vmatpush1.bf16.msra.mxu1 %v4148_v11 }
 0x1bf   :  { %956 = vmatprep.subr.bf16.mxu0 %v4153_v12  ;;  %999 = vmatprep.subr.bf16.mxu1 %v4156_v14 }
 0x1c2   :  { %957 = vmatpush1.bf16.msra.mxu0 %v4151_v15  ;;  %1000 = vmatpush1.bf16.msra.mxu1 %v4154_v16 }
 0x1c3   :  { %958 = vmatprep.subr.bf16.mxu0 %v4159_v20  ;;  %1001 = vmatprep.subr.bf16.mxu1 %v4162_v21 }
 0x1c6   :  { %959 = vmatpush1.bf16.msra.mxu0 %v4157_v22  ;;  %1002 = vmatpush1.bf16.msra.mxu1 %v4160_v23 }
 0x1c7   :  { %960 = vmatprep.subr.bf16.mxu0 %v4165_v24  ;;  %1003 = vmatprep.subr.bf16.mxu1 %v4168_v25 }
 0x1ca   :  { %961 = vmatpush1.bf16.msra.mxu0 %v4163_v26  ;;  %1004 = vmatpush1.bf16.msra.mxu1 %v4166_v27 }
 0x1cb   :  { %1024 = vmatprep.subr.bf16.mxu0 %v4686_v29 }
 0x1cd   :  { %971 = vmatmul.mubr.bf16.vlgmr.msra.gmra.mrb[4].mxu0 %v5031_v45  ;;  %1014 = vmatmul.mubr.bf16.vlgmr.msra.gmra.mrb[4].mxu1 %v5031_v45 }
 0x1ce   :  { %1025 = vmatpush1.bf16.msra.mxu0 %v4169_v28  ;;  %3667 = vmatprep.mubr.msk.bf16.mxu0 %vm107_vm0, %v5023_v42  ;;  %v4687_v42 = vmov 0.0  }
 0x1cf   :  { %1026 = vmatprep.subr.bf16.mxu0 %v4686_v29  ;;  %3917 = vmatprep.subr.bf16.mxu1 %v4687_v42 }
 0x1d0   :  { %3919 = vmatprep.mubr.msk.bf16.mxu1 %vm4688_vm1, %v4687_v42 }
 0x1d2   :  { %1027 = vmatpush1.bf16.msra.mxu0 %v4170_v30 }
 0x1d3   :  { %1028 = vmatprep.subr.bf16.mxu0 %v4686_v29 }
 0x1d6   :  { %1029 = vmatpush1.bf16.msra.mxu0 %v4171_v31 }
 0x1d7   :  { %1030 = vmatprep.subr.bf16.mxu0 %v4686_v29 }
 0x1da   :  { %1031 = vmatpush1.bf16.msra.mxu0 %v4172_v34 }
 0x1db   :  { %1032 = vmatprep.subr.bf16.mxu0 %v4686_v29 }
 0x1de   :  { %1033 = vmatpush1.bf16.msra.mxu0 %v4173_v35  ;;  %v4181_v35 = vld [vmem:[%s6120_s4] ss:$8 sps:$4 sm:$0xff]  }
 0x1df   :  { %1034 = vmatprep.subr.bf16.mxu0 %v4686_v29 }
 0x1e2   :  { %1035 = vmatpush1.bf16.msra.mxu0 %v4174_v36  ;;  %v4183_v36 = vld [vmem:[%s6120_s4 + $0x4] ss:$8 sps:$4 sm:$0xff]  }
 0x1e3   :  { %1036 = vmatprep.subr.bf16.mxu0 %v4686_v29 }
 0x1e6   :  { %1037 = vmatpush1.bf16.msra.mxu0 %v4175_v37  ;;  %v4186_v37 = vld [vmem:[%s6120_s4 + $0x14] ss:$8 sps:$4 sm:$0xff]  }
 0x1e7   :  { %1038 = vmatprep.subr.bf16.mxu0 %v4686_v29 }
 0x1ea   :  { %1039 = vmatpush1.bf16.msra.mxu0 %v4176_v32  ;;  %v4184_v32 = vld [vmem:[%s6120_s4 + $0x10] ss:$8 sps:$4 sm:$0xff]  }
 0x1eb   :  { %1040 = vmatprep.subr.bf16.mxu0 %v4686_v29 }
 0x1ee   :  { %1041 = vmatpush1.bf16.msra.mxu0 %v4177_v40  ;;  %v4189_v40 = vld [vmem:[%s6120_s4 + $0x24] ss:$8 sps:$4 sm:$0xff]  }
 0x1ef   :  { %1042 = vmatprep.subr.bf16.mxu0 %v4686_v29 }
 0x1f2   :  { %1043 = vmatpush1.bf16.msra.mxu0 %v4178_v33  ;;  %v4187_v33 = vld [vmem:[%s6120_s4 + $0x20] ss:$8 sps:$4 sm:$0xff]  }
 0x1f3   :  { %1044 = vmatprep.subr.bf16.mxu0 %v4686_v29 }
 0x1f6   :  { %1045 = vmatpush1.bf16.msra.mxu0 %v4179_v41  ;;  %v4192_v41 = vld [vmem:[%s6120_s4 + $0x34] ss:$8 sps:$4 sm:$0xff]  }
 0x1f7   :  { %1046 = vmatprep.subr.bf16.mxu0 %v4686_v29 }
 0x1fa   :  { %1047 = vmatpush1.bf16.msra.mxu0 %v4180_v43  ;;  %v4190_v43 = vld [vmem:[%s6120_s4 + $0x30] ss:$8 sps:$4 sm:$0xff]  }
 0x1fb   :  { %1384 = vmatprep.subr.bf16.mxu0 %v4183_v36 }
 0x1fd   :  { %1057 = vmatmul.mubr.bf16.vlgmr.msra.gmra.mrb[8].mxu0 %v5031_v45 }
 0x1fe   :  { %1416 = vmatprep.mubr.bf16.mxu0 %v4686_v29  ;;  %1385 = vmatpush1.bf16.msra.mxu0 %v4181_v35 }
 0x1ff   :  { %1386 = vmatprep.subr.bf16.mxu0 %v4186_v37 }
 0x202   :  { %1387 = vmatpush1.bf16.msra.mxu0 %v4184_v32 }
 0x203   :  { %1388 = vmatprep.subr.bf16.mxu0 %v4189_v40 }
 0x206   :  { %1389 = vmatpush1.bf16.msra.mxu0 %v4187_v33 }
 0x207   :  { %1390 = vmatprep.subr.bf16.mxu0 %v4192_v41 }
 0x20a   :  { %1391 = vmatpush1.bf16.msra.mxu0 %v4190_v43 }
 0x270   :  { %v886_v44 = vpop.f32.mrb[0].mxu0  ;;  %v929_v38 = vpop.f32.mrb[0].mxu1 }
 0x271   :  { %v888_v39 = vpop.f32.mrb[1].mxu0  ;;  %v5232_v46 = vpop.f32.mrb[1].mxu1  ;;  %v1083_v52 = vpack.c.bf16 %v886_v44, %v886_v44  ;;  %v1087_v45 = vpack.c.bf16 %v929_v38, %v929_v38  ;;  %v4195_v44 = vld [vmem:[%s6120_s4 + $0x44] ss:$8 sps:$4 sm:$0xff]   ;;  %v4193_v38 = vld [vmem:[%s6120_s4 + $0x40] ss:$8 sps:$4 sm:$0xff]  }
 0x272   :  { %v1085_v47 = vpack.c.bf16 %v888_v39, %v888_v39  ;;  %v890_v48 = vpop.f32.mrb[2].mxu0  ;;  %v5234_v49 = vpop.f32.mrb[2].mxu1  ;;  %1392 = vmatprep.subr.bf16.mxu0 %v4195_v44  ;;  %v4198_v39 = vld [vmem:[%s6120_s4 + $0x54] ss:$8 sps:$4 sm:$0xff]  }
 0x273   :  { %v892_v50 = vpop.f32.mrb[3].mxu0  ;;  %v5236_v51 = vpop.f32.mrb[3].mxu1  ;;  %v1084_v54 = vpack.c.bf16 %v890_v48, %v890_v48  ;;  %v1199_v55 = vsel %vm1197_vm2, %v1087_v45, 0  ;;  %1393 = vmatpush1.bf16.msra.mxu0 %v4193_v38  ;;  %v4201_v48 = vld [vmem:[%s6120_s4 + $0x64] ss:$8 sps:$4 sm:$0xff]  }
 0x274   :  { %3918 = vmatpush3.bf16.xpose.msra.mxu1 %v1085_v47  ;;  %v1086_v53 = vpack.c.bf16 %v892_v50, %v892_v50  ;;  %v4196_v47 = vld [vmem:[%s6120_s4 + $0x50] ss:$8 sps:$4 sm:$0xff]   ;;  %1394 = vmatprep.subr.bf16.mxu0 %v4198_v39  ;;  %v4199_v50 = vld [vmem:[%s6120_s4 + $0x60] ss:$8 sps:$4 sm:$0xff]  }
 0x275   :  { %3923 = vmatprep.subr.bf16.mxu1 %v4687_v42 }
 0x277   :  { %1395 = vmatpush1.bf16.msra.mxu0 %v4196_v47 }
 0x278   :  { %1396 = vmatprep.subr.bf16.mxu0 %v4201_v48 }
 0x27b   :  { %3920 = vmatmul.mubr.bf16.vlgmr.msra.gmra.mrb[8].mxu1 %v1083_v52  ;;  %1397 = vmatpush1.bf16.msra.mxu0 %v4199_v50 }
 0x27c   :  { %3924 = vmatpush3.bf16.xpose.msra.mxu1 %v1086_v53  ;;  %3925 = vmatprep.mubr.msk.bf16.mxu1 %vm4688_vm1, %v4687_v42 }
 0x27d   :  { %3929 = vmatprep.subr.bf16.mxu1 %v4687_v42 }
 0x283   :  { %3926 = vmatmul.mubr.bf16.vlgmr.msra.gmra.mrb[12].mxu1 %v1084_v54  ;;  %v1088_v54 = vpack.c.bf16 %v5234_v49, %v5234_v49 }
 0x284   :  { %3930 = vmatpush3.bf16.msra.mxu1 %v1199_v55  ;;  %3931 = vmatprep.mubr.msk.bf16.mxu1 %vm4688_vm1, %v4687_v42 }
 0x285   :  { %3935 = vmatprep.subr.bf16.mxu1 %v4687_v42 }
 0x2a0   :  { %v5246_v56 = vpop.f32.mrb[4].mxu0  ;;  %v5248_v57 = vpop.f32.mrb[4].mxu1 }
 0x2a1   :  { %v5250_v58 = vpop.f32.mrb[5].mxu0  ;;  %v5252_v59 = vpop.f32.mrb[5].mxu1 }
 0x2a2   :  { %v5254_v60 = vpop.f32.mrb[6].mxu0  ;;  %v5256_v61 = vpop.f32.mrb[6].mxu1 }
 0x2a3   :  { %v5258_v62 = vpop.f32.mrb[7].mxu0  ;;  %v5260_v63 = vpop.f32.mrb[7].mxu1 }
 0x2a4   :  { %v1436_v49 = vpack.c.bf16 %v5258_v62, %v5258_v62 }
 0x2d0   :  { %v5262_v0 = vpop.f32.mrb[8].mxu0 }
 0x2d1   :  { %v1060_v1 = vpop.f32.mrb[9].mxu0 }
 0x2d2   :  { %v5264_v2 = vpop.f32.mrb[10].mxu0 }
 0x2d3   :  { %v1063_v3 = vpop.f32.mrb[11].mxu0 }
 0x2d4   :  { %v1245_v3 = vsel %vm1197_vm2, %v1088_v54, 0  ;;  %v1777_v54 = vpack.c.bf16 %v5248_v57, %v5248_v57 }
 0x34e   :  { %v1123_v7 = vpop.f32.mrb[8].mxu1 }
 0x34f   :  { %v1124_v8 = vadd.f32 %v1123_v7, %v5268_v6  ;;  %v3921_v9 = vpop.f32.mrb[9].mxu1 }
 0x350   :  { %v1126_v10 = vpop.f32.mrb[10].mxu1  ;;  %v1431_v9 = vpack.c.bf16 %v5232_v46, %v5232_v46 }
 0x351   :  { %v3922_v11 = vpop.f32.mrb[11].mxu1  ;;  %v1170_v12 = vsel %vm1169_vm4, %v1124_v8, -inf  ;;  %v1591_v10 = vsel %vm1197_vm2, %v1436_v49, 0 }
 0x352   :  { %1171 = vmax.xlane.f32.xlu0 %v1170_v12  ;;  %v4202_v11 = vld [vmem:[%s6120_s4 + $0x70] ss:$8 sps:$4 sm:$0xff]  }
 0x356   :  { %v1163_v14 = vpop.f32.mrb[12].mxu1 }
 0x357   :  { %v1164_v15 = vadd.f32 %v1163_v14, %v5268_v6  ;;  %v3927_v16 = vpop.f32.mrb[13].mxu1 }
 0x358   :  { %v1166_v13 = vpop.f32.mrb[14].mxu1 }
 0x359   :  { %v3928_v20 = vpop.f32.mrb[15].mxu1  ;;  %v1173_v21 = vsel %vm1169_vm4, %v1164_v15, -inf }
 0x35a   :  { %1174 = vmax.xlane.f32.xlu1 %v1173_v21  ;;  %v1434_v20 = vpack.c.bf16 %v5254_v60, %v5254_v60 }
 0x3df   :  { %v1172_v22 = vpop.xlane.xlu0 %1171 }
 0x3e0   :  { %v1176_v23 = vsub.f32 %v1124_v8, %v1172_v22  ;;  %v1433_v8 = vpack.c.bf16 %v5246_v56, %v5246_v56  ;;  %v4204_v56 = vld [vmem:[%s6120_s4 + $0x74] ss:$8 sps:$4 sm:$0xff]  }
 0x3e1   :  { %1398 = vmatprep.subr.bf16.mxu0 %v4204_v56 }
 0x3e2   :  { %v1178_v24 = vmul.f32 1.442695, %v1176_v23  ;;  %1399 = vmatpush1.bf16.msra.mxu0 %v4202_v11  ;;  %v1435_v23 = vpack.c.bf16 %v5250_v58, %v5250_v58 }
 0x3e3   :  { %3947 = vmatprep.subr.bf16.mxu0 %v4687_v42 }
 0x3e4   :  { %4509 = vpow2.f32 %v1178_v24  ;;  %v1432_v24 = vpack.c.bf16 %v5236_v51, %v5236_v51  ;;  %v1545_v60 = vsel %vm1197_vm2, %v1435_v23, 0 }
 0x3e7   :  { %v1175_v25 = vpop.xlane.xlu1 %1174 }
 0x3e8   :  { %v1177_v26 = vsub.f32 %v1164_v15, %v1175_v25 }
 0x3ea   :  { %v1180_v27 = vmul.f32 1.442695, %v1177_v26 }
 0x3ec   :  { %4511 = vpow2.f32 %v1180_v27 }
 0x3ee   :  { %v4510_v28 = vpop.eup %4509 }
 0x3ef   :  { %v1182_v30 = vsel %vm1169_vm4, %v4510_v28, 0.0 }
 0x3f0   :  { %1183 = vadd.xlane.f32.xlu0 %v1182_v30 }
 0x3f6   :  { %v4512_v31 = vpop.eup %4511 }
 0x3f7   :  { %v1185_v34 = vsel %vm1169_vm4, %v4512_v31, 0.0 }
 0x3f8   :  { %1186 = vadd.xlane.f32.xlu1 %v1185_v34 }
 0x47d   :  { %v1184_v52 = vpop.xlane.xlu0 %1183 }
 0x47e   :  { %4513 = vrcp.f32 %v1184_v52 }
 0x485   :  { %v1187_v53 = vpop.xlane.xlu1 %1186 }
 0x486   :  { %4515 = vrcp.f32 %v1187_v53 }
 0x488   :  { %v4514_v45 = vpop.eup %4513 }
 0x489   :  { %v1190_v55 = vmul.f32 %v4514_v45, %v4510_v28  ;;  %v1779_v45 = vpack.c.bf16 %v5252_v59, %v5252_v59  ;;  %v1781_v59 = vpack.c.bf16 %v5262_v0, %v5262_v0 }
 0x48b   :  { %v1192_v1 = vpack.c.bf16 %v1190_v55, %v1190_v55  ;;  %v1780_v55 = vpack.c.bf16 %v5260_v63, %v5260_v63 }
 0x48d   :  { %3932 = vmatmul.mubr.msk.bf16.vlgmr.msra.gmra.mrb[16].mxu1 %vm1169_vm4, %v1192_v1  ;;  %v1778_v1 = vpack.c.bf16 %v5256_v61, %v5256_v61 }
 0x48e   :  { %3936 = vmatpush3.bf16.msra.mxu1 %v1245_v3  ;;  %3937 = vmatprep.mubr.msk.bf16.mxu1 %vm4688_vm1, %v4687_v42  ;;  %v1891_v3 = vsel %vm1197_vm2, %v1781_v59, 0  ;;  %v4231_v59 = vld [vmem:[%s6120_s4 + $0x104] ss:$8 sps:$4 sm:$0xff]  }
 0x48f   :  { %3941 = vmatprep.subr.bf16.mxu1 %v4687_v42 }
 0x490   :  { %v4516_v4 = vpop.eup %4515 }
 0x491   :  { %v1191_v5 = vmul.f32 %v4516_v4, %v4512_v31 }
 0x493   :  { %v1193_v7 = vpack.c.bf16 %v1191_v5, %v1191_v5 }
 0x495   :  { %3938 = vmatmul.mubr.msk.bf16.vlgmr.msra.gmra.mrb[20].mxu1 %vm1169_vm4, %v1193_v7 }
 0x496   :  { %3943 = vmatprep.mubr.msk.bf16.mxu1 %vm4688_vm1, %v4687_v42 }
 0x497   :  { %3942 = vmatpush3.bf16.xpose.msra.mxu1 %v1433_v8 }
 0x498   :  { %3959 = vmatprep.subr.bf16.mxu1 %v4687_v42 }
 0x49e   :  { %3944 = vmatmul.mubr.bf16.vlgmr.msra.gmra.mrb[24].mxu1 %v1431_v9 }
 0x49f   :  { %3960 = vmatpush3.bf16.msra.mxu1 %v1591_v10  ;;  %3961 = vmatprep.mubr.msk.bf16.mxu1 %vm4688_vm1, %v4687_v42 }
 0x560   :  { %v1235_v46 = vpop.f32.mrb[16].mxu1 }
 0x561   :  { %v3933_v62 = vpop.f32.mrb[17].mxu1 }
 0x562   :  { %v1238_v12 = vpop.f32.mrb[18].mxu1 }
 0x563   :  { %v3934_v14 = vpop.f32.mrb[19].mxu1 }
 0x568   :  { %v1281_v15 = vpop.f32.mrb[20].mxu1 }
 0x569   :  { %v1287_v16 = vpack.c.bf16 %v1281_v15, %v1235_v46  ;;  %v3939_v13 = vpop.f32.mrb[21].mxu1 }
 0x56a   :  { %v1284_v21 = vpop.f32.mrb[22].mxu1 }
 0x56b   :  { %v3940_v22 = vpop.f32.mrb[23].mxu1  ;;  %1417 = vmatmul.mubr.bf16.vlgmr.msra.gmra.mrb[12].mxu0 %v1287_v16 }
 0x56c   :  { %3948 = vmatpush3.bf16.xpose.msra.mxu0 %v1434_v20  ;;  %3949 = vmatprep.mubr.msk.bf16.mxu0 %vm4688_vm1, %v4687_v42 }
 0x56d   :  { %3953 = vmatprep.subr.bf16.mxu0 %v4687_v42 }
 0x571   :  { %v1471_v25 = vpop.f32.mrb[24].mxu1 }
 0x572   :  { %v1472_v26 = vadd.f32 %v1471_v25, %v5268_v6  ;;  %v3945_v27 = vpop.f32.mrb[25].mxu1 }
 0x573   :  { %v1474_v28 = vpop.f32.mrb[26].mxu1  ;;  %3950 = vmatmul.mubr.bf16.vlgmr.msra.gmra.mrb[16].mxu0 %v1432_v24 }
 0x574   :  { %v3946_v30 = vpop.f32.mrb[27].mxu1  ;;  %3954 = vmatpush3.bf16.msra.mxu0 %v1545_v60  ;;  %v1517_v31 = vsel %vm1169_vm4, %v1472_v26, -inf  ;;  %3955 = vmatprep.mubr.msk.bf16.mxu0 %vm4688_vm1, %v4687_v42 }
 0x575   :  { %1518 = vmax.xlane.f32.xlu0 %v1517_v31  ;;  %3965 = vmatprep.subr.bf16.mxu0 %v4687_v42 }
 0x602   :  { %v1519_v58 = vpop.xlane.xlu0 %1518 }
 0x603   :  { %v1523_v51 = vsub.f32 %v1472_v26, %v1519_v58 }
 0x605   :  { %v1525_v34 = vmul.f32 1.442695, %v1523_v51 }
 0x607   :  { %4517 = vpow2.f32 %v1525_v34  ;;  %v4205_v34 = vld [vmem:[%s6120_s4 + $0x80] ss:$8 sps:$4 sm:$0xff]  }
 0x611   :  { %v4518_v35 = vpop.eup %4517 }
 0x612   :  { %v1529_v36 = vsel %vm1169_vm4, %v4518_v35, 0.0 }
 0x613   :  { %1530 = vadd.xlane.f32.xlu1 %v1529_v36  ;;  %v4210_v36 = vld [vmem:[%s6120_s4 + $0x94] ss:$8 sps:$4 sm:$0xff]  }
 0x63e   :  { %v5361_v37 = vpop.f32.mrb[12].mxu0 }
 0x63f   :  { %v5363_v32 = vpop.f32.mrb[13].mxu0 }
 0x640   :  { %v5365_v40 = vpop.f32.mrb[14].mxu0 }
 0x641   :  { %v5367_v33 = vpop.f32.mrb[15].mxu0 }
 0x646   :  { %v1511_v41 = vpop.f32.mrb[16].mxu0 }
 0x647   :  { %v1512_v43 = vadd.f32 %v1511_v41, %v5268_v6  ;;  %v3951_v44 = vpop.f32.mrb[17].mxu0  ;;  %v4208_v41 = vld [vmem:[%s6120_s4 + $0x90] ss:$8 sps:$4 sm:$0xff]  }
 0x648   :  { %v1514_v38 = vpop.f32.mrb[18].mxu0  ;;  %v4211_v44 = vld [vmem:[%s6120_s4 + $0xa0] ss:$8 sps:$4 sm:$0xff]  }
 0x649   :  { %v3952_v39 = vpop.f32.mrb[19].mxu0  ;;  %v1520_v47 = vsel %vm1169_vm4, %v1512_v43, -inf  ;;  %v4216_v38 = vld [vmem:[%s6120_s4 + $0xb4] ss:$8 sps:$4 sm:$0xff]  }
 0x64a   :  { %1521 = vmax.xlane.f32.xlu0 %v1520_v47  ;;  %v4214_v39 = vld [vmem:[%s6120_s4 + $0xb0] ss:$8 sps:$4 sm:$0xff]   ;;  %v4219_v47 = vld [vmem:[%s6120_s4 + $0xc4] ss:$8 sps:$4 sm:$0xff]  }
 0x6a0   :  { %v1531_v48 = vpop.xlane.xlu1 %1530 }
 0x6a1   :  { %4519 = vrcp.f32 %v1531_v48  ;;  %v4217_v48 = vld [vmem:[%s6120_s4 + $0xc0] ss:$8 sps:$4 sm:$0xff]  }
 0x6ab   :  { %v4520_v50 = vpop.eup %4519 }
 0x6ac   :  { %v1537_v52 = vmul.f32 %v4520_v50, %v4518_v35  ;;  %v4207_v35 = vld [vmem:[%s6120_s4 + $0x84] ss:$8 sps:$4 sm:$0xff]   ;;  %v4222_v50 = vld [vmem:[%s6120_s4 + $0xd4] ss:$8 sps:$4 sm:$0xff]  }
 0x6ad   :  { %1730 = vmatprep.subr.bf16.mxu1 %v4207_v35 }
 0x6ae   :  { %v1539_v53 = vpack.c.bf16 %v1537_v52, %v1537_v52  ;;  %v4220_v52 = vld [vmem:[%s6120_s4 + $0xd0] ss:$8 sps:$4 sm:$0xff]  }
 0x6b0   :  { %3956 = vmatmul.mubr.msk.bf16.vlgmr.msra.gmra.mrb[20].mxu0 %vm1169_vm4, %v1539_v53  ;;  %v4225_v53 = vld [vmem:[%s6120_s4 + $0xe4] ss:$8 sps:$4 sm:$0xff]  }
 0x6b1   :  { %3966 = vmatpush3.bf16.xpose.msra.mxu0 %v1779_v45  ;;  %3967 = vmatprep.mubr.msk.bf16.mxu0 %vm4688_vm1, %v4687_v42  ;;  %v4223_v45 = vld [vmem:[%s6120_s4 + $0xe0] ss:$8 sps:$4 sm:$0xff]  }
 0x6b2   :  { %3971 = vmatprep.subr.bf16.mxu0 %v4687_v42 }
 0x6b8   :  { %3968 = vmatmul.mubr.bf16.vlgmr.msra.gmra.mrb[24].mxu0 %v1777_v54  ;;  %v4228_v54 = vld [vmem:[%s6120_s4 + $0xf4] ss:$8 sps:$4 sm:$0xff]  }
 0x6b9   :  { %3972 = vmatpush3.bf16.xpose.msra.mxu0 %v1780_v55  ;;  %3973 = vmatprep.mubr.msk.bf16.mxu0 %vm4688_vm1, %v4687_v42  ;;  %v4226_v55 = vld [vmem:[%s6120_s4 + $0xf0] ss:$8 sps:$4 sm:$0xff]  }
 0x6ba   :  { %3977 = vmatprep.subr.bf16.mxu0 %v4687_v42 }
 0x6c0   :  { %3974 = vmatmul.mubr.bf16.vlgmr.msra.gmra.mrb[28].mxu0 %v1778_v1 }
 0x6c1   :  { %3978 = vmatpush3.bf16.msra.mxu0 %v1891_v3  ;;  %3979 = vmatprep.mubr.msk.bf16.mxu0 %vm4688_vm1, %v4687_v42 }
 0x6c2   :  { %3983 = vmatprep.subr.bf16.mxu0 %v4687_v42 }
 0x6d7   :  { %v1522_v57 = vpop.xlane.xlu0 %1521 }
 0x6d8   :  { %v1524_v63 = vsub.f32 %v1512_v43, %v1522_v57  ;;  %v4213_v43 = vld [vmem:[%s6120_s4 + $0xa4] ss:$8 sps:$4 sm:$0xff]  }
 0x6da   :  { %v1527_v4 = vmul.f32 1.442695, %v1524_v63  ;;  %v1782_v63 = vpack.c.bf16 %v5264_v2, %v5264_v2  ;;  %v4229_v2 = vld [vmem:[%s6120_s4 + $0x100] ss:$8 sps:$4 sm:$0xff]  }
 0x6dc   :  { %4521 = vpow2.f32 %v1527_v4 }
 0x6e6   :  { %v4522_v46 = vpop.eup %4521 }
 0x6e7   :  { %v1532_v62 = vsel %vm1169_vm4, %v4522_v46, 0.0 }
 0x783   :  { %v5392_v5 = vpop.f32.mrb[20].mxu0 }
 0x784   :  { %v3957_v7 = vpop.f32.mrb[21].mxu0 }
 0x785   :  { %v1584_v0 = vpop.f32.mrb[22].mxu0 }
 0x786   :  { %v3958_v8 = vpop.f32.mrb[23].mxu0  ;;  %v1937_v0 = vsel %vm1197_vm2, %v1782_v63, 0 }
 0x78b   :  { %v1817_v49 = vpop.f32.mrb[24].mxu0 }
 0x78c   :  { %v1818_v61 = vadd.f32 %v1817_v49, %v5268_v6  ;;  %v3969_v9 = vpop.f32.mrb[25].mxu0 }
 0x78d   :  { %v1820_v10 = vpop.f32.mrb[26].mxu0 }
 0x78e   :  { %v3970_v56 = vpop.f32.mrb[27].mxu0  ;;  %v1863_v11 = vsel %vm1169_vm4, %v1818_v61, -inf }
 0x78f   :  { %1864 = vmax.xlane.f32.xlu1 %v1863_v11  ;;  %v4234_v11 = vld [vmem:[%s6120_s4 + $0x114] ss:$8 sps:$4 sm:$0xff]  }
 0x793   :  { %1533 = vadd.xlane.f32.xlu1 %v1532_v62  ;;  %v1857_v12 = vpop.f32.mrb[28].mxu0 }
 0x794   :  { %v1858_v14 = vadd.f32 %v1857_v12, %v5268_v6  ;;  %v3975_v15 = vpop.f32.mrb[29].mxu0  ;;  %v4235_v12 = vld [vmem:[%s6120_s4 + $0x120] ss:$8 sps:$4 sm:$0xff]  }
 0x795   :  { %v1860_v16 = vpop.f32.mrb[30].mxu0  ;;  %v4243_v15 = vld [vmem:[%s6120_s4 + $0x144] ss:$8 sps:$4 sm:$0xff]  }
 0x796   :  { %v3976_v13 = vpop.f32.mrb[31].mxu0  ;;  %v1866_v20 = vsel %vm1169_vm4, %v1858_v14, -inf  ;;  %v4241_v16 = vld [vmem:[%s6120_s4 + $0x140] ss:$8 sps:$4 sm:$0xff]  }
 0x797   :  { %1867 = vmax.xlane.f32.xlu0 %v1866_v20  ;;  %v4246_v13 = vld [vmem:[%s6120_s4 + $0x154] ss:$8 sps:$4 sm:$0xff]   ;;  %v4244_v20 = vld [vmem:[%s6120_s4 + $0x150] ss:$8 sps:$4 sm:$0xff]  }
 0x81c   :  { %v1865_v21 = vpop.xlane.xlu1 %1864 }
 0x81d   :  { %v1869_v22 = vsub.f32 %v1818_v61, %v1865_v21  ;;  %v4249_v21 = vld [vmem:[%s6120_s4 + $0x164] ss:$8 sps:$4 sm:$0xff]  }
 0x81f   :  { %v1871_v23 = vmul.f32 1.442695, %v1869_v22  ;;  %v4247_v22 = vld [vmem:[%s6120_s4 + $0x160] ss:$8 sps:$4 sm:$0xff]  }
 0x820   :  { %v1534_v24 = vpop.xlane.xlu1 %1533 }
 0x821   :  { %4523 = vpow2.f32 %v1871_v23  ;;  %v4252_v23 = vld [vmem:[%s6120_s4 + $0x174] ss:$8 sps:$4 sm:$0xff]  }
 0x822   :  { %4525 = vrcp.f32 %v1534_v24  ;;  %v4250_v24 = vld [vmem:[%s6120_s4 + $0x170] ss:$8 sps:$4 sm:$0xff]  }
 0x824   :  { %v1868_v25 = vpop.xlane.xlu0 %1867 }
 0x825   :  { %v1870_v26 = vsub.f32 %v1858_v14, %v1868_v25  ;;  %v4240_v14 = vld [vmem:[%s6120_s4 + $0x134] ss:$8 sps:$4 sm:$0xff]  }
 0x827   :  { %v1873_v27 = vmul.f32 1.442695, %v1870_v26 }
 0x829   :  { %4527 = vpow2.f32 %v1873_v27 }
 0x82b   :  { %v4524_v60 = vpop.eup %4523 }
 0x82c   :  { %v4526_v28 = vpop.eup %4525  ;;  %v1875_v6 = vsel %vm1169_vm4, %v4524_v60, 0.0 }
 0x82d   :  { %v1538_v30 = vmul.f32 %v4526_v28, %v4522_v46  ;;  %1876 = vadd.xlane.f32.xlu0 %v1875_v6 }
 0x82f   :  { %v1540_v31 = vpack.c.bf16 %v1538_v30, %v1538_v30 }
 0x831   :  { %3962 = vmatmul.mubr.msk.bf16.vlgmr.msra.gmra.mrb[28].mxu1 %vm1169_vm4, %v1540_v31 }
 0x832   :  { %1762 = vmatprep.mubr.bf16.mxu1 %v4686_v29  ;;  %1731 = vmatpush1.bf16.msra.mxu1 %v4205_v34 }
 0x833   :  { %v4528_v58 = vpop.eup %4527  ;;  %1732 = vmatprep.subr.bf16.mxu1 %v4210_v36 }
 0x834   :  { %v1878_v51 = vsel %vm1169_vm4, %v4528_v58, 0.0 }
 0x835   :  { %1879 = vadd.xlane.f32.xlu1 %v1878_v51  ;;  %v1071_v51 = vld [vmem:[#allocation2] sm:$0x3] }
 0x836   :  { %1733 = vmatpush1.bf16.msra.mxu1 %v4208_v41  ;;  %v1076_v34 = vrot.slane %v1071_v51, %v5004_v18  ;;  %v1080_v35 = vrot.slane %v1071_v51, %v5007_v19 }
 0x837   :  { %1734 = vmatprep.subr.bf16.mxu1 %v4213_v43 }
 0x838   :  { %v1427_v36 = vadd.f32 %v5361_v37, %v1076_v34  ;;  %v1428_v41 = vadd.f32 %v5363_v32, %v1080_v35  ;;  %v4538_v32 = vld [vmem:[%s6116_s0] sm:$0xff] }
 0x83a   :  { %1735 = vmatpush1.bf16.msra.mxu1 %v4211_v44  ;;  %v1429_v44 = vadd.f32 %v5365_v40, %v1076_v34 }
 0x83b   :  { %1736 = vmatprep.subr.bf16.mxu1 %v4216_v38 }
 0x83e   :  { %1737 = vmatpush1.bf16.msra.mxu1 %v4214_v39 }
 0x83f   :  { %1738 = vmatprep.subr.bf16.mxu1 %v4219_v47  ;;  %v1430_v47 = vadd.f32 %v5367_v33, %v1080_v35  ;;  %v4539_v33 = vld [vmem:[%s6116_s0 + $0x18] sm:$0xff] }
 0x842   :  { %1739 = vmatpush1.bf16.msra.mxu1 %v4217_v48 }
 0x843   :  { %1740 = vmatprep.subr.bf16.mxu1 %v4222_v50 }
 0x846   :  { %1741 = vmatpush1.bf16.msra.mxu1 %v4220_v52 }
 0x847   :  { %1742 = vmatprep.subr.bf16.mxu1 %v4225_v53 }
 0x84a   :  { %1743 = vmatpush1.bf16.msra.mxu1 %v4223_v45  ;;  %v4537_v45 = vld [vmem:[%s6116_s0 + $0x8] sm:$0xff] }
 0x84b   :  { %1744 = vmatprep.subr.bf16.mxu1 %v4228_v54 }
 0x84e   :  { %1745 = vmatpush1.bf16.msra.mxu1 %v4226_v55 }
 0x84f   :  { %2076 = vmatprep.subr.bf16.mxu1 %v4231_v59 }
 0x8ba   :  { %v1877_v1 = vpop.xlane.xlu0 %1876 }
 0x8bb   :  { %4529 = vrcp.f32 %v1877_v1  ;;  %v4540_v1 = vld [vmem:[%s6116_s0 + $0x10] sm:$0xff] }
 0x8c2   :  { %v1880_v3 = vpop.xlane.xlu1 %1879 }
 0x8c3   :  { %4531 = vrcp.f32 %v1880_v3 }
 0x8c5   :  { %v4530_v57 = vpop.eup %4529 }
 0x8c6   :  { %v1883_v4 = vmul.f32 %v4530_v57, %v4524_v60 }
 0x8c8   :  { %v1885_v7 = vpack.c.bf16 %v1883_v4, %v1883_v4 }
 0x8ca   :  { %3980 = vmatmul.mubr.msk.bf16.vlgmr.msra.gmra.mrb[32].mxu0 %vm1169_vm4, %v1885_v7  ;;  %v4253_v7 = vld [vmem:[%s6124_s8] ss:$24 sps:$4 sm:$0xff]  }
 0x8cb   :  { %3984 = vmatpush3.bf16.msra.mxu0 %v1937_v0  ;;  %3985 = vmatprep.mubr.msk.bf16.mxu0 %vm4688_vm1, %v4687_v42  ;;  %v4232_v42 = vld [vmem:[%s6120_s4 + $0x110] ss:$8 sps:$4 sm:$0xff]   ;;  %v4255_v0 = vld [vmem:[%s6124_s8 + $0x4] ss:$24 sps:$4 sm:$0xff]  }
 0x8cc   :  { %2664 = vmatprep.subr.bf16.mxu0 %v4255_v0  ;;  %v4316_v0 = vld [vmem:[%s6124_s8 + $0x1e8] ss:$24 sps:$4 sm:$0xff]  }
 0x8cd   :  { %v4532_v8 = vpop.eup %4531 }
 0x8ce   :  { %v1884_v49 = vmul.f32 %v4532_v8, %v4528_v58  ;;  %v4256_v8 = vld [vmem:[%s6124_s8 + $0x8] ss:$24 sps:$4 sm:$0xff]  }
 0x8d0   :  { %v1886_v61 = vpack.c.bf16 %v1884_v49, %v1884_v49  ;;  %v4258_v49 = vld [vmem:[%s6124_s8 + $0xc] ss:$24 sps:$4 sm:$0xff]  }
 0x8d2   :  { %3986 = vmatmul.mubr.msk.bf16.vlgmr.msra.gmra.mrb[36].mxu0 %vm1169_vm4, %v1886_v61  ;;  %v4261_v61 = vld [vmem:[%s6124_s8 + $0x34] ss:$24 sps:$4 sm:$0xff]  }
 0x8d3   :  { %2665 = vmatpush1.bf16.msra.mxu0 %v4253_v7  ;;  %v4313_v7 = vld [vmem:[%s6124_s8 + $0x1e0] ss:$24 sps:$4 sm:$0xff]  }
 0x8d4   :  { %2666 = vmatprep.subr.bf16.mxu0 %v4261_v61  ;;  %v4319_v61 = vld [vmem:[%s6124_s8 + $0x210] ss:$24 sps:$4 sm:$0xff]  }
 0x904   :  { %v1627_v9 = vpop.f32.mrb[28].mxu1 }
 0x905   :  { %v1633_v10 = vpack.c.bf16 %v1627_v9, %v5392_v5  ;;  %v3963_v56 = vpop.f32.mrb[29].mxu1  ;;  %v4237_v5 = vld [vmem:[%s6120_s4 + $0x124] ss:$8 sps:$4 sm:$0xff]   ;;  %v4264_v9 = vld [vmem:[%s6124_s8 + $0x3c] ss:$24 sps:$4 sm:$0xff]  }
 0x906   :  { %v1630_v46 = vpop.f32.mrb[30].mxu1  ;;  %v4267_v56 = vld [vmem:[%s6124_s8 + $0x64] ss:$24 sps:$4 sm:$0xff]  }
 0x907   :  { %v3964_v62 = vpop.f32.mrb[31].mxu1  ;;  %1763 = vmatmul.mubr.bf16.vlgmr.msra.gmra.mrb[32].mxu1 %v1633_v10  ;;  %v4262_v10 = vld [vmem:[%s6124_s8 + $0x38] ss:$24 sps:$4 sm:$0xff]  }
 0x908   :  { %2077 = vmatpush1.bf16.msra.mxu1 %v4229_v2  ;;  %2108 = vmatprep.mubr.bf16.mxu1 %v4686_v29  ;;  %v4238_v29 = vld [vmem:[%s6120_s4 + $0x130] ss:$8 sps:$4 sm:$0xff]   ;;  %v4268_v62 = vld [vmem:[%s6124_s8 + $0x68] ss:$24 sps:$4 sm:$0xff]  }
 0x909   :  { %2078 = vmatprep.subr.bf16.mxu1 %v4234_v11  ;;  %v4259_v2 = vld [vmem:[%s6124_s8 + $0x30] ss:$24 sps:$4 sm:$0xff]   ;;  %v4270_v11 = vld [vmem:[%s6124_s8 + $0x6c] ss:$24 sps:$4 sm:$0xff]   ;;  %v4265_v46 = vld [vmem:[%s6124_s8 + $0x60] ss:$24 sps:$4 sm:$0xff]  }
 0x90a   :  { %2667 = vmatpush1.bf16.msra.mxu0 %v4259_v2  ;;  %v4322_v2 = vld [vmem:[%s6124_s8 + $0x218] ss:$24 sps:$4 sm:$0xff]  }
 0x90b   :  { %2668 = vmatprep.subr.bf16.mxu0 %v4267_v56  ;;  %v4363_v56 = vld [vmem:[%s6126_s10 + $0x104] ss:$8 sps:$4 sm:$0xff]  }
 0x90c   :  { %2079 = vmatpush1.bf16.msra.mxu1 %v4232_v42  ;;  %v4273_v42 = vld [vmem:[%s6124_s8 + $0x94] ss:$24 sps:$4 sm:$0xff]  }
 0x90d   :  { %2080 = vmatprep.subr.bf16.mxu1 %v4237_v5  ;;  %v4276_v5 = vld [vmem:[%s6124_s8 + $0x9c] ss:$24 sps:$4 sm:$0xff]  }
 0x90e   :  { %2669 = vmatpush1.bf16.msra.mxu0 %v4265_v46 }
 0x90f   :  { %2670 = vmatprep.subr.bf16.mxu0 %v4273_v42 }
 0x910   :  { %2081 = vmatpush1.bf16.msra.mxu1 %v4235_v12  ;;  %v4271_v12 = vld [vmem:[%s6124_s8 + $0x90] ss:$24 sps:$4 sm:$0xff]  }
 0x911   :  { %2082 = vmatprep.subr.bf16.mxu1 %v4240_v14  ;;  %v4274_v14 = vld [vmem:[%s6124_s8 + $0x98] ss:$24 sps:$4 sm:$0xff]  }
 0x912   :  { %2671 = vmatpush1.bf16.msra.mxu0 %v4271_v12 }
 0x914   :  { %2083 = vmatpush1.bf16.msra.mxu1 %v4238_v29  ;;  %v4279_v29 = vld [vmem:[%s6124_s8 + $0xc4] ss:$24 sps:$4 sm:$0xff]  }
 0x915   :  { %2084 = vmatprep.subr.bf16.mxu1 %v4243_v15  ;;  %v4282_v15 = vld [vmem:[%s6124_s8 + $0xcc] ss:$24 sps:$4 sm:$0xff]   ;;  %2672 = vmatprep.subr.bf16.mxu0 %v4279_v29 }
 0x916   :  { %v2128_v29 = vld [vmem:[#allocation7] sm:$0x3] }
 0x918   :  { %2085 = vmatpush1.bf16.msra.mxu1 %v4241_v16  ;;  %v4277_v16 = vld [vmem:[%s6124_s8 + $0xc0] ss:$24 sps:$4 sm:$0xff]  }
 0x919   :  { %2086 = vmatprep.subr.bf16.mxu1 %v4246_v13  ;;  %v4280_v13 = vld [vmem:[%s6124_s8 + $0xc8] ss:$24 sps:$4 sm:$0xff]   ;;  %2673 = vmatpush1.bf16.msra.mxu0 %v4277_v16 }
 0x91c   :  { %2087 = vmatpush1.bf16.msra.mxu1 %v4244_v20  ;;  %v4285_v20 = vld [vmem:[%s6124_s8 + $0xf4] ss:$24 sps:$4 sm:$0xff]  }
 0x91d   :  { %2088 = vmatprep.subr.bf16.mxu1 %v4249_v21  ;;  %v4288_v21 = vld [vmem:[%s6124_s8 + $0xfc] ss:$24 sps:$4 sm:$0xff]   ;;  %2674 = vmatprep.subr.bf16.mxu0 %v4285_v20 }
 0x920   :  { %2089 = vmatpush1.bf16.msra.mxu1 %v4247_v22  ;;  %v4283_v22 = vld [vmem:[%s6124_s8 + $0xf0] ss:$24 sps:$4 sm:$0xff]  }
 0x921   :  { %2090 = vmatprep.subr.bf16.mxu1 %v4252_v23  ;;  %v4286_v23 = vld [vmem:[%s6124_s8 + $0xf8] ss:$24 sps:$4 sm:$0xff]   ;;  %2675 = vmatpush1.bf16.msra.mxu0 %v4283_v22 }
 0x924   :  { %2091 = vmatpush1.bf16.msra.mxu1 %v4250_v24 }
 0x925   :  { %2707 = vmatprep.subr.bf16.mxu1 %v4258_v49  ;;  %v4321_v49 = vld [vmem:[%s6124_s8 + $0x214] ss:$24 sps:$4 sm:$0xff]  }
 0x99d   :  { %v1927_v25 = vpop.f32.mrb[32].mxu0 }
 0x99e   :  { %v3981_v26 = vpop.f32.mrb[33].mxu0 }
 0x99f   :  { %v1930_v27 = vpop.f32.mrb[34].mxu0 }
 0x9a0   :  { %v3982_v60 = vpop.f32.mrb[35].mxu0 }
 0x9a5   :  { %v1973_v28 = vpop.f32.mrb[36].mxu0 }
 0x9a6   :  { %v1979_v6 = vpack.c.bf16 %v1973_v28, %v1927_v25  ;;  %v3987_v30 = vpop.f32.mrb[37].mxu0 }
 0x9a7   :  { %v1976_v31 = vpop.f32.mrb[38].mxu0 }
 0x9a8   :  { %v3988_v58 = vpop.f32.mrb[39].mxu0  ;;  %2109 = vmatmul.mubr.bf16.vlgmr.msra.gmra.mrb[32].mxu1 %v1979_v6 }
 0x9a9   :  { %2708 = vmatpush1.bf16.msra.mxu1 %v4256_v8  ;;  %v4318_v8 = vld [vmem:[%s6124_s8 + $0x1ec] ss:$24 sps:$4 sm:$0xff]  }
 0x9aa   :  { %2709 = vmatprep.subr.bf16.mxu1 %v4264_v9  ;;  %v4324_v9 = vld [vmem:[%s6124_s8 + $0x21c] ss:$24 sps:$4 sm:$0xff]  }
 0x9ad   :  { %2710 = vmatpush1.bf16.msra.mxu1 %v4262_v10  ;;  %v4327_v10 = vld [vmem:[%s6124_s8 + $0x14] ss:$24 sps:$4 sm:$0xff]  }
 0x9ae   :  { %2711 = vmatprep.subr.bf16.mxu1 %v4270_v11 }
 0x9b1   :  { %2712 = vmatpush1.bf16.msra.mxu1 %v4268_v62 }
 0x9b2   :  { %2713 = vmatprep.subr.bf16.mxu1 %v4276_v5 }
 0x9b5   :  { %2714 = vmatpush1.bf16.msra.mxu1 %v4274_v14  ;;  %v2127_v14 = vld [vmem:[#allocation5] sm:$0x3] }
 0x9b6   :  { %2715 = vmatprep.subr.bf16.mxu1 %v4282_v15  ;;  %v2173_v15 = vrot.slane %v2127_v14, %v5007_v19  ;;  %v2169_v16 = vrot.slane %v2127_v14, %v5004_v18  ;;  %v4417_v14 = vld [vmem:[%s6126_s10 + $0x194] ss:$8 sps:$4 sm:$0xff]  }
 0x9b9   :  { %2716 = vmatpush1.bf16.msra.mxu1 %v4280_v13 }
 0x9ba   :  { %2717 = vmatprep.subr.bf16.mxu1 %v4288_v21 }
 0x9bd   :  { %2718 = vmatpush1.bf16.msra.mxu1 %v4286_v23  ;;  %v2188_v23 = vrot.slane %v2128_v29, %v5007_v19 }
 0xa7b   :  { %v2110_v43 = vpop.f32.mrb[32].mxu1 }
 0xa7c   :  { %v3990_v38 = vadd.f32 %v2110_v43, %v1427_v36  ;;  %v2112_v39 = vpop.f32.mrb[33].mxu1 }
 0xa7d   :  { %v3992_v48 = vadd.f32 %v2112_v39, %v1428_v41  ;;  %v2114_v50 = vpop.f32.mrb[34].mxu1  ;;  %v4294_v39 = vld [vmem:[%s6124_s8 + $0x12c] ss:$24 sps:$4 sm:$0xff]  }
 0xa7e   :  { %v3994_v52 = vadd.f32 %v2114_v50, %v1429_v44  ;;  %v2116_v53 = vpop.f32.mrb[35].mxu1  ;;  %v5522_v40 = vadd.f32 %v4538_v32, %v3990_v38  ;;  %v4291_v44 = vld [vmem:[%s6124_s8 + $0x124] ss:$24 sps:$4 sm:$0xff]   ;;  %v4289_v38 = vld [vmem:[%s6124_s8 + $0x120] ss:$24 sps:$4 sm:$0xff]   ;;  %2719 = vmatprep.subr.bf16.mxu1 %v4294_v39 }
 0xa7f   :  { %v5517_v54 = vadd.f32 %v4537_v45, %v3992_v48  ;;  %v3996_v37 = vadd.f32 %v2116_v53, %v1430_v47  ;;  %2676 = vmatprep.subr.bf16.mxu0 %v4291_v44  ;;  %v4292_v47 = vld [vmem:[%s6124_s8 + $0x128] ss:$24 sps:$4 sm:$0xff]   ;;  %v4297_v48 = vld [vmem:[%s6124_s8 + $0x154] ss:$24 sps:$4 sm:$0xff]   ;;  %v4298_v53 = vld [vmem:[%s6124_s8 + $0x158] ss:$24 sps:$4 sm:$0xff]  }
 0xa80   :  { %v5534_v3 = vadd.f32 %v4540_v1, %v3994_v52  ;;  %2677 = vmatpush1.bf16.msra.mxu0 %v4289_v38  ;;  %2720 = vmatpush1.bf16.msra.mxu1 %v4292_v47  ;;  %v4295_v50 = vld [vmem:[%s6124_s8 + $0x150] ss:$24 sps:$4 sm:$0xff]   ;;  %v4300_v52 = vld [vmem:[%s6124_s8 + $0x15c] ss:$24 sps:$4 sm:$0xff]   ;;  %v4306_v32 = vld [vmem:[%s6124_s8 + $0x18c] ss:$24 sps:$4 sm:$0xff]  }
 0xa81   :  { %v5527_v55 = vadd.f32 %v4539_v33, %v3996_v37  ;;  %v2129_v59 = vsel %vm107_vm0, %v5517_v54, 0.0  ;;  %2678 = vmatprep.subr.bf16.mxu0 %v4297_v48  ;;  %2721 = vmatprep.subr.bf16.mxu1 %v4300_v52  ;;  %v4303_v45 = vld [vmem:[%s6124_s8 + $0x184] ss:$24 sps:$4 sm:$0xff]   ;;  %v4301_v37 = vld [vmem:[%s6124_s8 + $0x180] ss:$24 sps:$4 sm:$0xff]  }
 0xa82   :  { %v2130_v57 = vadd.f32 %v2129_v59, %v5522_v40  ;;  %v4304_v33 = vld [vmem:[%s6124_s8 + $0x188] ss:$24 sps:$4 sm:$0xff]   ;;  %v4309_v59 = vld [vmem:[%s6124_s8 + $0x1b4] ss:$24 sps:$4 sm:$0xff]   ;;  %v4367_v47 = vld [vmem:[%s6126_s10 + $0x110] ss:$8 sps:$4 sm:$0xff]  }
 0xa83   :  { %v2133_v63 = vsel %vm107_vm0, %v5527_v55, 0.0  ;;  %v4307_v1 = vld [vmem:[%s6124_s8 + $0x1b0] ss:$24 sps:$4 sm:$0xff]   ;;  %v4369_v44 = vld [vmem:[%s6126_s10 + $0x114] ss:$8 sps:$4 sm:$0xff]  }
 0xa84   :  { %2131 = vadd.xlane.f32.xlu0 %v2130_v57  ;;  %v2134_v4 = vadd.f32 %v2133_v63, %v5534_v3  ;;  %2679 = vmatpush1.bf16.msra.mxu0 %v4295_v50  ;;  %v4312_v57 = vld [vmem:[%s6124_s8 + $0x1bc] ss:$24 sps:$4 sm:$0xff]   ;;  %v4310_v63 = vld [vmem:[%s6124_s8 + $0x1b8] ss:$24 sps:$4 sm:$0xff]   ;;  %v4375_v48 = vld [vmem:[%s6126_s10 + $0x124] ss:$8 sps:$4 sm:$0xff]  }
 0xa85   :  { %2722 = vmatpush1.bf16.msra.mxu1 %v4298_v53  ;;  %2680 = vmatprep.subr.bf16.mxu0 %v4303_v45  ;;  %v4328_v38 = vld [vmem:[%s6124_s8 + $0x40] ss:$24 sps:$4 sm:$0xff]   ;;  %v4333_v39 = vld [vmem:[%s6124_s8 + $0x74] ss:$24 sps:$4 sm:$0xff]   ;;  %v4331_v50 = vld [vmem:[%s6124_s8 + $0x70] ss:$24 sps:$4 sm:$0xff]  }
 0xa86   :  { %2135 = vadd.xlane.f32.xlu1 %v2134_v4  ;;  %2723 = vmatprep.subr.bf16.mxu1 %v4306_v32  ;;  %v4315_v4 = vld [vmem:[%s6124_s8 + $0x1e4] ss:$24 sps:$4 sm:$0xff]   ;;  %v4373_v53 = vld [vmem:[%s6126_s10 + $0x120] ss:$8 sps:$4 sm:$0xff]   ;;  %v4339_v32 = vld [vmem:[%s6124_s8 + $0xd4] ss:$24 sps:$4 sm:$0xff]  }
 0xa87   :  { %v4336_v52 = vld [vmem:[%s6124_s8 + $0xa4] ss:$24 sps:$4 sm:$0xff]  }
 0xa88   :  { %2681 = vmatpush1.bf16.msra.mxu0 %v4301_v37  ;;  %v4381_v45 = vld [vmem:[%s6126_s10 + $0x134] ss:$8 sps:$4 sm:$0xff]   ;;  %v4334_v37 = vld [vmem:[%s6124_s8 + $0xa0] ss:$24 sps:$4 sm:$0xff]  }
 0xa89   :  { %2724 = vmatpush1.bf16.msra.mxu1 %v4304_v33  ;;  %2682 = vmatprep.subr.bf16.mxu0 %v4309_v59  ;;  %v4379_v33 = vld [vmem:[%s6126_s10 + $0x130] ss:$8 sps:$4 sm:$0xff]   ;;  %v4387_v59 = vld [vmem:[%s6126_s10 + $0x144] ss:$8 sps:$4 sm:$0xff]  }
 0xa8a   :  { %2725 = vmatprep.subr.bf16.mxu1 %v4312_v57  ;;  %v4342_v57 = vld [vmem:[%s6124_s8 + $0x104] ss:$24 sps:$4 sm:$0xff]  }
 0xa8c   :  { %2683 = vmatpush1.bf16.msra.mxu0 %v4307_v1  ;;  %v4337_v1 = vld [vmem:[%s6124_s8 + $0xd0] ss:$24 sps:$4 sm:$0xff]  }
 0xa8d   :  { %2726 = vmatpush1.bf16.msra.mxu1 %v4310_v63  ;;  %2684 = vmatprep.subr.bf16.mxu0 %v4315_v4  ;;  %v4385_v63 = vld [vmem:[%s6126_s10 + $0x140] ss:$8 sps:$4 sm:$0xff]   ;;  %v4393_v4 = vld [vmem:[%s6126_s10 + $0x154] ss:$8 sps:$4 sm:$0xff]  }
 0xa8e   :  { %2727 = vmatprep.subr.bf16.mxu1 %v4318_v8  ;;  %v4391_v8 = vld [vmem:[%s6126_s10 + $0x150] ss:$8 sps:$4 sm:$0xff]  }
 0xa90   :  { %2685 = vmatpush1.bf16.msra.mxu0 %v4313_v7  ;;  %v4340_v7 = vld [vmem:[%s6124_s8 + $0x100] ss:$24 sps:$4 sm:$0xff]  }
 0xa91   :  { %2728 = vmatpush1.bf16.msra.mxu1 %v4316_v0  ;;  %2686 = vmatprep.subr.bf16.mxu0 %v4321_v49  ;;  %v4345_v0 = vld [vmem:[%s6124_s8 + $0x134] ss:$24 sps:$4 sm:$0xff]  }
 0xa92   :  { %2729 = vmatprep.subr.bf16.mxu1 %v4324_v9  ;;  %v4399_v49 = vld [vmem:[%s6126_s10 + $0x164] ss:$8 sps:$4 sm:$0xff]  }
 0xa93   :  { %v4348_v9 = vld [vmem:[%s6124_s8 + $0x164] ss:$24 sps:$4 sm:$0xff]  }
 0xa94   :  { %2687 = vmatpush1.bf16.msra.mxu0 %v4319_v61  ;;  %v4343_v61 = vld [vmem:[%s6124_s8 + $0x130] ss:$24 sps:$4 sm:$0xff]  }
 0xa95   :  { %2730 = vmatpush1.bf16.msra.mxu1 %v4322_v2  ;;  %2750 = vmatprep.subr.bf16.mxu0 %v4327_v10  ;;  %v4397_v2 = vld [vmem:[%s6126_s10 + $0x160] ss:$8 sps:$4 sm:$0xff]   ;;  %v4405_v10 = vld [vmem:[%s6126_s10 + $0x174] ss:$8 sps:$4 sm:$0xff]  }
 0xa96   :  { %3442 = vmatprep.subr.bf16.mxu1 %v4363_v56  ;;  %v4346_v56 = vld [vmem:[%s6124_s8 + $0x160] ss:$24 sps:$4 sm:$0xff]  }
 0xb11   :  { %v2132_v24 = vpop.xlane.xlu0 %2131 }
 0xb12   :  { %v2137_v25 = vmul.f32 0.0052083335, %v2132_v24  ;;  %v2184_v24 = vrot.slane %v2128_v29, %v5004_v18  ;;  %v4352_v29 = vld [vmem:[%s6124_s8 + $0x1c0] ss:$24 sps:$4 sm:$0xff]  }
 0xb13   :  { %v2136_v26 = vpop.xlane.xlu1 %2135 }
 0xb14   :  { %v5613_v27 = vsub.f32 %v5522_v40, %v2137_v25  ;;  %v5616_v60 = vsub.f32 %v5517_v54, %v2137_v25  ;;  %v2138_v28 = vmul.f32 0.0052083335, %v2136_v26 }
 0xb16   :  { %v5619_v6 = vsub.f32 %v5534_v3, %v2138_v28  ;;  %v5622_v30 = vsub.f32 %v5527_v55, %v2138_v28  ;;  %v2143_v31 = vmul.f32 %v5613_v27, %v5613_v27  ;;  %v2144_v58 = vmul.f32 %v5616_v60, %v5616_v60 }
 0xb18   :  { %v2147_v51 = vsel %vm107_vm0, %v2144_v58, 0.0  ;;  %v2145_v34 = vmul.f32 %v5619_v6, %v5619_v6  ;;  %v2146_v35 = vmul.f32 %v5622_v30, %v5622_v30 }
 0xb19   :  { %v2148_v36 = vadd.f32 %v2147_v51, %v2143_v31 }
 0xb1a   :  { %v2151_v41 = vsel %vm107_vm0, %v2146_v35, 0.0 }
 0xb1b   :  { %2149 = vadd.xlane.f32.xlu0 %v2148_v36  ;;  %v2152_v43 = vadd.f32 %v2151_v41, %v2145_v34 }
 0xb1d   :  { %2153 = vadd.xlane.f32.xlu1 %v2152_v43 }
 0xba8   :  { %v2150_v11 = vpop.xlane.xlu0 %2149 }
 0xba9   :  { %v2155_v46 = vmul.f32 0.0052083335, %v2150_v11  ;;  %v4351_v11 = vld [vmem:[%s6124_s8 + $0x194] ss:$24 sps:$4 sm:$0xff]  }
 0xbaa   :  { %v2154_v62 = vpop.xlane.xlu1 %2153 }
 0xbab   :  { %v2157_v42 = vadd.f32 1e-05, %v2155_v46  ;;  %v2156_v5 = vmul.f32 0.0052083335, %v2154_v62  ;;  %v4403_v46 = vld [vmem:[%s6126_s10 + $0x170] ss:$8 sps:$4 sm:$0xff]  }
 0xbac   :  { %v4411_v62 = vld [vmem:[%s6126_s10 + $0x184] ss:$8 sps:$4 sm:$0xff]  }
 0xbad   :  { %4533 = vrsqrt.f32 %v2157_v42  ;;  %v2158_v12 = vadd.f32 1e-05, %v2156_v5  ;;  %v4349_v42 = vld [vmem:[%s6124_s8 + $0x190] ss:$24 sps:$4 sm:$0xff]   ;;  %v4354_v5 = vld [vmem:[%s6124_s8 + $0x1c4] ss:$24 sps:$4 sm:$0xff]  }
 0xbaf   :  { %4535 = vrsqrt.f32 %v2158_v12  ;;  %v4409_v12 = vld [vmem:[%s6126_s10 + $0x180] ss:$8 sps:$4 sm:$0xff]  }
 0xbb7   :  { %v4534_v13 = vpop.eup %4533 }
 0xbb8   :  { %v2161_v20 = vmul.f32 %v4534_v13, %v5613_v27  ;;  %v2162_v21 = vmul.f32 %v4534_v13, %v5616_v60  ;;  %v4325_v60 = vld [vmem:[%s6124_s8 + $0x10] ss:$24 sps:$4 sm:$0xff]   ;;  %v4423_v13 = vld [vmem:[%s6126_s10 + $0x1a4] ss:$8 sps:$4 sm:$0xff]  }
 0xbb9   :  { %v4536_v22 = vpop.eup %4535 }
 0xbba   :  { %v2163_v25 = vmul.f32 %v4536_v22, %v5619_v6  ;;  %v2164_v26 = vmul.f32 %v4536_v22, %v5622_v30  ;;  %v2177_v28 = vmul.f32 %v2173_v15, %v2162_v21  ;;  %v2176_v31 = vmul.f32 %v2169_v16, %v2161_v20  ;;  %v4330_v6 = vld [vmem:[%s6124_s8 + $0x44] ss:$24 sps:$4 sm:$0xff]   ;;  %v4361_v30 = vld [vmem:[%s6126_s10 + $0x100] ss:$8 sps:$4 sm:$0xff]  }
 0xbbb   :  { %v4355_v20 = vld [vmem:[%s6124_s8 + $0x1f0] ss:$24 sps:$4 sm:$0xff]   ;;  %v4360_v21 = vld [vmem:[%s6124_s8 + $0x224] ss:$24 sps:$4 sm:$0xff]  }
 0xbbc   :  { %v2179_v58 = vmul.f32 %v2173_v15, %v2164_v26  ;;  %v2178_v51 = vmul.f32 %v2169_v16, %v2163_v25  ;;  %v2192_v34 = vadd.f32 %v2188_v23, %v2177_v28  ;;  %v2191_v36 = vadd.f32 %v2184_v24, %v2176_v31  ;;  %v4357_v15 = vld [vmem:[%s6124_s8 + $0x1f4] ss:$24 sps:$4 sm:$0xff]   ;;  %v4415_v16 = vld [vmem:[%s6126_s10 + $0x190] ss:$8 sps:$4 sm:$0xff]   ;;  %v4421_v22 = vld [vmem:[%s6126_s10 + $0x1a0] ss:$8 sps:$4 sm:$0xff]  }
 0xbbd   :  { %v4366_v25 = vld [vmem:[%s6126_s10 + $0x4] ss:$8 sps:$4 sm:$0xff]   ;;  %v4427_v26 = vld [vmem:[%s6126_s10 + $0x1b0] ss:$8 sps:$4 sm:$0xff]   ;;  %v4364_v31 = vld [vmem:[%s6126_s10] ss:$8 sps:$4 sm:$0xff]  }
 0xbbe   :  { %v2194_v35 = vadd.f32 %v2188_v23, %v2179_v58  ;;  %v2193_v41 = vadd.f32 %v2184_v24, %v2178_v51  ;;  %v4429_v23 = vld [vmem:[%s6126_s10 + $0x1b4] ss:$8 sps:$4 sm:$0xff]   ;;  %v4358_v24 = vld [vmem:[%s6124_s8 + $0x220] ss:$24 sps:$4 sm:$0xff]   ;;  %v4435_v28 = vld [vmem:[%s6126_s10 + $0x1c4] ss:$8 sps:$4 sm:$0xff]  }
 0xbbf   :  { %v4372_v58 = vld [vmem:[%s6126_s10 + $0x14] ss:$8 sps:$4 sm:$0xff]   ;;  %v4433_v51 = vld [vmem:[%s6126_s10 + $0x1c0] ss:$8 sps:$4 sm:$0xff]  }
 0xbc0   :  { %v2196_v27 = vpack.c.bf16 %v2194_v35, %v2192_v34  ;;  %v5723_v43 = vpack.c.bf16 %v2193_v41, %v2191_v36  ;;  %v4441_v34 = vld [vmem:[%s6126_s10 + $0x1d4] ss:$8 sps:$4 sm:$0xff]   ;;  %v4370_v35 = vld [vmem:[%s6126_s10 + $0x10] ss:$8 sps:$4 sm:$0xff]   ;;  %v4378_v36 = vld [vmem:[%s6126_s10 + $0x24] ss:$8 sps:$4 sm:$0xff]  }
 0xbc1   :  { %v4439_v41 = vld [vmem:[%s6126_s10 + $0x1d0] ss:$8 sps:$4 sm:$0xff]  }
 0xbc2   :  { %3794 = vmatprep.mubr.msk.bf16.mxu0 %vm107_vm0, %v2196_v27  ;;  %3795 = vmatprep.mubr.msk.bf16.mxu1 %vm107_vm0, %v2196_v27 }
 0xbc3   :  { %2697 = vmatmul.mubr.bf16.vlgmr.msra.gmra.mrb[40].mxu0 %v5723_v43  ;;  %2740 = vmatmul.mubr.bf16.vlgmr.msra.gmra.mrb[36].mxu1 %v5723_v43 }
 0xbc4   :  { %2751 = vmatpush1.bf16.msra.mxu0 %v4325_v60  ;;  %3796 = vmatprep.mubr.msk.bf16.mxu0 %vm107_vm0, %v2196_v27  ;;  %v4376_v27 = vld [vmem:[%s6126_s10 + $0x20] ss:$8 sps:$4 sm:$0xff]   ;;  %v4384_v60 = vld [vmem:[%s6126_s10 + $0x34] ss:$8 sps:$4 sm:$0xff]  }
 0xbc5   :  { %2752 = vmatprep.subr.bf16.mxu0 %v4330_v6  ;;  %3443 = vmatpush1.bf16.msra.mxu1 %v4361_v30  ;;  %v4390_v6 = vld [vmem:[%s6126_s10 + $0x44] ss:$8 sps:$4 sm:$0xff]   ;;  %v4388_v30 = vld [vmem:[%s6126_s10 + $0x40] ss:$8 sps:$4 sm:$0xff]  }
 0xbc6   :  { %3444 = vmatprep.subr.bf16.mxu1 %v4369_v44  ;;  %v4396_v44 = vld [vmem:[%s6126_s10 + $0x54] ss:$8 sps:$4 sm:$0xff]  }
 0xbc8   :  { %2753 = vmatpush1.bf16.msra.mxu0 %v4328_v38  ;;  %v4394_v38 = vld [vmem:[%s6126_s10 + $0x50] ss:$8 sps:$4 sm:$0xff]  }
 0xbc9   :  { %2754 = vmatprep.subr.bf16.mxu0 %v4333_v39  ;;  %3445 = vmatpush1.bf16.msra.mxu1 %v4367_v47  ;;  %v4402_v39 = vld [vmem:[%s6126_s10 + $0x64] ss:$8 sps:$4 sm:$0xff]   ;;  %v4400_v47 = vld [vmem:[%s6126_s10 + $0x60] ss:$8 sps:$4 sm:$0xff]  }
 0xbca   :  { %3446 = vmatprep.subr.bf16.mxu1 %v4375_v48  ;;  %v4408_v48 = vld [vmem:[%s6126_s10 + $0x74] ss:$8 sps:$4 sm:$0xff]  }
 0xbcc   :  { %2755 = vmatpush1.bf16.msra.mxu0 %v4331_v50  ;;  %v4406_v50 = vld [vmem:[%s6126_s10 + $0x70] ss:$8 sps:$4 sm:$0xff]  }
 0xbcd   :  { %2756 = vmatprep.subr.bf16.mxu0 %v4336_v52  ;;  %3447 = vmatpush1.bf16.msra.mxu1 %v4373_v53  ;;  %v4414_v52 = vld [vmem:[%s6126_s10 + $0x84] ss:$8 sps:$4 sm:$0xff]   ;;  %v4412_v53 = vld [vmem:[%s6126_s10 + $0x80] ss:$8 sps:$4 sm:$0xff]  }
 0xbce   :  { %3448 = vmatprep.subr.bf16.mxu1 %v4381_v45  ;;  %v4420_v45 = vld [vmem:[%s6126_s10 + $0x94] ss:$8 sps:$4 sm:$0xff]  }
 0xbd0   :  { %2757 = vmatpush1.bf16.msra.mxu0 %v4334_v37  ;;  %v4418_v37 = vld [vmem:[%s6126_s10 + $0x90] ss:$8 sps:$4 sm:$0xff]  }
 0xbd1   :  { %2758 = vmatprep.subr.bf16.mxu0 %v4339_v32  ;;  %3449 = vmatpush1.bf16.msra.mxu1 %v4379_v33  ;;  %v4426_v32 = vld [vmem:[%s6126_s10 + $0xa4] ss:$8 sps:$4 sm:$0xff]  }
 0xbd2   :  { %3450 = vmatprep.subr.bf16.mxu1 %v4387_v59  ;;  %v4447_v33 = vld [vmem:[%s6126_s10 + $0x1e4] ss:$8 sps:$4 sm:$0xff]   ;;  %v4424_v59 = vld [vmem:[%s6126_s10 + $0xa0] ss:$8 sps:$4 sm:$0xff]  }
 0xbd4   :  { %2759 = vmatpush1.bf16.msra.mxu0 %v4337_v1  ;;  %v4445_v1 = vld [vmem:[%s6126_s10 + $0x1e0] ss:$8 sps:$4 sm:$0xff]  }
 0xbd5   :  { %2760 = vmatprep.subr.bf16.mxu0 %v4342_v57  ;;  %3451 = vmatpush1.bf16.msra.mxu1 %v4385_v63  ;;  %v4432_v57 = vld [vmem:[%s6126_s10 + $0xb4] ss:$8 sps:$4 sm:$0xff]  }
 0xbd6   :  { %3452 = vmatprep.subr.bf16.mxu1 %v4393_v4  ;;  %v4453_v63 = vld [vmem:[%s6126_s10 + $0x1f4] ss:$8 sps:$4 sm:$0xff]   ;;  %v4430_v4 = vld [vmem:[%s6126_s10 + $0xb0] ss:$8 sps:$4 sm:$0xff]  }
 0xbd8   :  { %2761 = vmatpush1.bf16.msra.mxu0 %v4340_v7  ;;  %v4451_v7 = vld [vmem:[%s6126_s10 + $0x1f0] ss:$8 sps:$4 sm:$0xff]  }
 0xbd9   :  { %2762 = vmatprep.subr.bf16.mxu0 %v4345_v0  ;;  %3453 = vmatpush1.bf16.msra.mxu1 %v4391_v8  ;;  %v4438_v0 = vld [vmem:[%s6126_s10 + $0xc4] ss:$8 sps:$4 sm:$0xff]  }
 0xbda   :  { %3454 = vmatprep.subr.bf16.mxu1 %v4399_v49  ;;  %v4459_v8 = vld [vmem:[%s6126_s10 + $0x204] ss:$8 sps:$4 sm:$0xff]   ;;  %v4436_v49 = vld [vmem:[%s6126_s10 + $0xc0] ss:$8 sps:$4 sm:$0xff]  }
 0xbdc   :  { %2763 = vmatpush1.bf16.msra.mxu0 %v4343_v61  ;;  %v4444_v61 = vld [vmem:[%s6126_s10 + $0xd4] ss:$8 sps:$4 sm:$0xff]  }
 0xbdd   :  { %2764 = vmatprep.subr.bf16.mxu0 %v4348_v9  ;;  %3455 = vmatpush1.bf16.msra.mxu1 %v4397_v2  ;;  %v4442_v9 = vld [vmem:[%s6126_s10 + $0xd0] ss:$8 sps:$4 sm:$0xff]   ;;  %v4450_v2 = vld [vmem:[%s6126_s10 + $0xe4] ss:$8 sps:$4 sm:$0xff]  }
 0xbde   :  { %3456 = vmatprep.subr.bf16.mxu1 %v4405_v10  ;;  %v4448_v10 = vld [vmem:[%s6126_s10 + $0xe0] ss:$8 sps:$4 sm:$0xff]  }
 0xbe0   :  { %2765 = vmatpush1.bf16.msra.mxu0 %v4346_v56  ;;  %v4456_v56 = vld [vmem:[%s6126_s10 + $0xf4] ss:$8 sps:$4 sm:$0xff]  }
 0xbe1   :  { %2766 = vmatprep.subr.bf16.mxu0 %v4351_v11  ;;  %3457 = vmatpush1.bf16.msra.mxu1 %v4403_v46  ;;  %v4454_v11 = vld [vmem:[%s6126_s10 + $0xf0] ss:$8 sps:$4 sm:$0xff]   ;;  %v2281_v46 = vsub.s32 2, %v5001_v17 }
 0xbe2   :  { %3458 = vmatprep.subr.bf16.mxu1 %v4411_v62  ;;  %v5990_v62 = vld [vmem:[#allocation8] sm:$0x3f] }
 0xbe4   :  { %2767 = vmatpush1.bf16.msra.mxu0 %v4349_v42  ;;  %v2285_v42 = vsub.s32 3, %v5001_v17 }
 0xbe5   :  { %2768 = vmatprep.subr.bf16.mxu0 %v4354_v5  ;;  %3459 = vmatpush1.bf16.msra.mxu1 %v4409_v12  ;;  %v2274_v5 = vrot.slane %v5990_v62, %v5004_v18  ;;  %v2282_v12 = vrot.slane %v5990_v62, %v2281_v46  ;;  %v4489_v46 = vld [vmem:[%s6126_s10 + $0x2a4] ss:$8 sps:$4 sm:$0xff]  }
 0xbe6   :  { %3460 = vmatprep.subr.bf16.mxu1 %v4417_v14  ;;  %v2278_v14 = vrot.slane %v5990_v62, %v5007_v19 }
 0xbe8   :  { %2769 = vmatpush1.bf16.msra.mxu0 %v4352_v29  ;;  %v2286_v29 = vrot.slane %v5990_v62, %v2285_v42 }
 0xbe9   :  { %2770 = vmatprep.subr.bf16.mxu0 %v4357_v15  ;;  %3461 = vmatpush1.bf16.msra.mxu1 %v4415_v16 }
 0xbea   :  { %3462 = vmatprep.subr.bf16.mxu1 %v4423_v13 }
 0xbec   :  { %2771 = vmatpush1.bf16.msra.mxu0 %v4355_v20 }
 0xbed   :  { %2772 = vmatprep.subr.bf16.mxu0 %v4360_v21  ;;  %3463 = vmatpush1.bf16.msra.mxu1 %v4421_v22 }
 0xbee   :  { %3464 = vmatprep.subr.bf16.mxu1 %v4429_v23 }
 0xbf0   :  { %2773 = vmatpush1.bf16.msra.mxu0 %v4358_v24 }
 0xbf1   :  { %3399 = vmatprep.subr.bf16.mxu0 %v4366_v25  ;;  %3465 = vmatpush1.bf16.msra.mxu1 %v4427_v26 }
 0xbf2   :  { %3466 = vmatprep.subr.bf16.mxu1 %v4435_v28 }
 0xbf3   :  { %2783 = vmatmul.mubr.bf16.vlgmr.msra.gmra.mrb[44].mxu0 %v5723_v43  ;;  %v4382_v43 = vld [vmem:[%s6126_s10 + $0x30] ss:$8 sps:$4 sm:$0xff]  }
 0xbf4   :  { %3400 = vmatpush1.bf16.msra.mxu0 %v4364_v31 }
 0xbf5   :  { %3401 = vmatprep.subr.bf16.mxu0 %v4372_v58  ;;  %3467 = vmatpush1.bf16.msra.mxu1 %v4433_v51 }
 0xbf6   :  { %3468 = vmatprep.subr.bf16.mxu1 %v4441_v34 }
 0xbf8   :  { %3402 = vmatpush1.bf16.msra.mxu0 %v4370_v35 }
 0xbf9   :  { %3403 = vmatprep.subr.bf16.mxu0 %v4378_v36  ;;  %3469 = vmatpush1.bf16.msra.mxu1 %v4439_v41 }
 0xbfa   :  { %3470 = vmatprep.subr.bf16.mxu1 %v4447_v33  ;;  %v4466_v33 = vld [vmem:[%s6126_s10 + $0x230] ss:$8 sps:$4 sm:$0xff]  }
 0xbfc   :  { %3404 = vmatpush1.bf16.msra.mxu0 %v4376_v27 }
 0xbfd   :  { %3405 = vmatprep.subr.bf16.mxu0 %v4384_v60  ;;  %3471 = vmatpush1.bf16.msra.mxu1 %v4445_v1  ;;  %v4469_v1 = vld [vmem:[%s6126_s10 + $0x240] ss:$8 sps:$4 sm:$0xff]  }
 0xbfe   :  { %3472 = vmatprep.subr.bf16.mxu1 %v4453_v63  ;;  %v4472_v63 = vld [vmem:[%s6126_s10 + $0x250] ss:$8 sps:$4 sm:$0xff]  }
 0xc00   :  { %3406 = vmatpush1.bf16.msra.mxu0 %v4382_v43 }
 0xc01   :  { %3407 = vmatprep.subr.bf16.mxu0 %v4390_v6  ;;  %3473 = vmatpush1.bf16.msra.mxu1 %v4451_v7  ;;  %v4475_v7 = vld [vmem:[%s6126_s10 + $0x260] ss:$8 sps:$4 sm:$0xff]  }
 0xc02   :  { %3485 = vmatprep.subr.bf16.mxu1 %v4459_v8  ;;  %v4478_v8 = vld [vmem:[%s6126_s10 + $0x270] ss:$8 sps:$4 sm:$0xff]  }
 0xc04   :  { %3408 = vmatpush1.bf16.msra.mxu0 %v4388_v30 }
 0xc05   :  { %3409 = vmatprep.subr.bf16.mxu0 %v4396_v44 }
 0xc08   :  { %3410 = vmatpush1.bf16.msra.mxu0 %v4394_v38 }
 0xc09   :  { %3411 = vmatprep.subr.bf16.mxu0 %v4402_v39 }
 0xc0c   :  { %3412 = vmatpush1.bf16.msra.mxu0 %v4400_v47 }
 0xc0d   :  { %3413 = vmatprep.subr.bf16.mxu0 %v4408_v48 }
 0xc10   :  { %3414 = vmatpush1.bf16.msra.mxu0 %v4406_v50  ;;  %v4457_v50 = vld [vmem:[%s6126_s10 + $0x200] ss:$8 sps:$4 sm:$0xff]  }
 0xc11   :  { %3415 = vmatprep.subr.bf16.mxu0 %v4414_v52  ;;  %v4462_v52 = vld [vmem:[%s6126_s10 + $0x214] ss:$8 sps:$4 sm:$0xff]  }
 0xc14   :  { %3416 = vmatpush1.bf16.msra.mxu0 %v4412_v53  ;;  %v4460_v53 = vld [vmem:[%s6126_s10 + $0x210] ss:$8 sps:$4 sm:$0xff]  }
 0xc15   :  { %3417 = vmatprep.subr.bf16.mxu0 %v4420_v45  ;;  %v4465_v45 = vld [vmem:[%s6126_s10 + $0x224] ss:$8 sps:$4 sm:$0xff]  }
 0xc18   :  { %3418 = vmatpush1.bf16.msra.mxu0 %v4418_v37  ;;  %v4463_v37 = vld [vmem:[%s6126_s10 + $0x220] ss:$8 sps:$4 sm:$0xff]  }
 0xc19   :  { %3419 = vmatprep.subr.bf16.mxu0 %v4426_v32  ;;  %v4468_v32 = vld [vmem:[%s6126_s10 + $0x234] ss:$8 sps:$4 sm:$0xff]  }
 0xc1c   :  { %3420 = vmatpush1.bf16.msra.mxu0 %v4424_v59  ;;  %v4471_v59 = vld [vmem:[%s6126_s10 + $0x244] ss:$8 sps:$4 sm:$0xff]  }
 0xc1d   :  { %3421 = vmatprep.subr.bf16.mxu0 %v4432_v57  ;;  %v4474_v57 = vld [vmem:[%s6126_s10 + $0x254] ss:$8 sps:$4 sm:$0xff]  }
 0xc20   :  { %3422 = vmatpush1.bf16.msra.mxu0 %v4430_v4  ;;  %v4477_v4 = vld [vmem:[%s6126_s10 + $0x264] ss:$8 sps:$4 sm:$0xff]  }
 0xc21   :  { %3423 = vmatprep.subr.bf16.mxu0 %v4438_v0  ;;  %v4480_v0 = vld [vmem:[%s6126_s10 + $0x274] ss:$8 sps:$4 sm:$0xff]  }
 0xc24   :  { %3424 = vmatpush1.bf16.msra.mxu0 %v4436_v49  ;;  %v4483_v49 = vld [vmem:[%s6126_s10 + $0x284] ss:$8 sps:$4 sm:$0xff]  }
 0xc25   :  { %3425 = vmatprep.subr.bf16.mxu0 %v4444_v61  ;;  %v4481_v61 = vld [vmem:[%s6126_s10 + $0x280] ss:$8 sps:$4 sm:$0xff]  }
 0xc28   :  { %3426 = vmatpush1.bf16.msra.mxu0 %v4442_v9  ;;  %v4486_v9 = vld [vmem:[%s6126_s10 + $0x294] ss:$8 sps:$4 sm:$0xff]  }
 0xc29   :  { %3427 = vmatprep.subr.bf16.mxu0 %v4450_v2  ;;  %v2289_v2 = vsub.s32 4, %v5001_v17 }
 0xc2c   :  { %3428 = vmatpush1.bf16.msra.mxu0 %v4448_v10  ;;  %v2293_v10 = vsub.s32 5, %v5001_v17  ;;  %v4487_v17 = vld [vmem:[%s6126_s10 + $0x2a0] ss:$8 sps:$4 sm:$0xff]  }
 0xc2d   :  { %3429 = vmatprep.subr.bf16.mxu0 %v4456_v56  ;;  %v4484_v56 = vld [vmem:[%s6126_s10 + $0x290] ss:$8 sps:$4 sm:$0xff]  }
 0xc2e   :  { %v2294_v42 = vrot.slane %v5990_v62, %v2293_v10 }
 0xc30   :  { %3430 = vmatpush1.bf16.msra.mxu0 %v4454_v11  ;;  %v2290_v11 = vrot.slane %v5990_v62, %v2289_v2  ;;  %v4490_v62 = vld [vmem:[%s6126_s10 + $0x2b0] ss:$8 sps:$4 sm:$0xff]  }
 0xc96   :  { %v2698_v15 = vpop.f32.mrb[40].mxu0  ;;  %v2741_v16 = vpop.f32.mrb[36].mxu1 }
 0xc97   :  { %v2699_v13 = vadd.f32 %v2698_v15, %v2274_v5  ;;  %v2742_v20 = vadd.f32 %v2741_v16, %v2282_v12  ;;  %v2700_v21 = vpop.f32.mrb[41].mxu0  ;;  %v2743_v22 = vpop.f32.mrb[37].mxu1 }
 0xc98   :  { %v2701_v23 = vadd.f32 %v2700_v21, %v2278_v14  ;;  %v2744_v24 = vadd.f32 %v2743_v22, %v2286_v29  ;;  %v2702_v25 = vpop.f32.mrb[42].mxu0  ;;  %v2745_v26 = vpop.f32.mrb[38].mxu1 }
 0xc99   :  { %v2703_v28 = vadd.f32 %v2702_v25, %v2274_v5  ;;  %v2746_v31 = vadd.f32 %v2745_v26, %v2282_v12  ;;  %v2704_v58 = vpop.f32.mrb[43].mxu0  ;;  %v2747_v51 = vpop.f32.mrb[39].mxu1  ;;  %v2793_v36 = vmax.f32 %v2699_v13, 0.0  ;;  %v2795_v41 = vmax.f32 %v2742_v20, 0.0 }
 0xc9a   :  { %v2705_v34 = vadd.f32 %v2704_v58, %v2278_v14  ;;  %v2748_v35 = vadd.f32 %v2747_v51, %v2286_v29  ;;  %v2794_v43 = vmax.f32 %v2701_v23, 0.0  ;;  %v2796_v6 = vmax.f32 %v2744_v24, 0.0  ;;  %v4492_v29 = vld [vmem:[%s6126_s10 + $0x2b4] ss:$8 sps:$4 sm:$0xff]   ;;  %v4495_v24 = vld [vmem:[%s6126_s10 + $0x2c4] ss:$8 sps:$4 sm:$0xff]  }
 0xc9b   :  { %v2799_v27 = vmax.f32 %v2703_v28, 0.0  ;;  %v2801_v60 = vmax.f32 %v2746_v31, 0.0  ;;  %v4493_v58 = vld [vmem:[%s6126_s10 + $0x2c0] ss:$8 sps:$4 sm:$0xff]   ;;  %v4498_v51 = vld [vmem:[%s6126_s10 + $0x2d4] ss:$8 sps:$4 sm:$0xff]  }
 0xc9c   :  { %v2800_v30 = vmax.f32 %v2705_v34, 0.0  ;;  %v2802_v44 = vmax.f32 %v2748_v35, 0.0  ;;  %v4496_v34 = vld [vmem:[%s6126_s10 + $0x2d0] ss:$8 sps:$4 sm:$0xff]   ;;  %v4501_v35 = vld [vmem:[%s6126_s10 + $0x2e4] ss:$8 sps:$4 sm:$0xff]  }
 0xc9d   :  { %v2805_v38 = vpack.c.bf16 %v2799_v27, %v2793_v36  ;;  %v2807_v39 = vpack.c.bf16 %v2801_v60, %v2795_v41  ;;  %v4499_v36 = vld [vmem:[%s6126_s10 + $0x2e0] ss:$8 sps:$4 sm:$0xff]   ;;  %v4504_v41 = vld [vmem:[%s6126_s10 + $0x2f4] ss:$8 sps:$4 sm:$0xff]   ;;  %v4502_v27 = vld [vmem:[%s6126_s10 + $0x2f0] ss:$8 sps:$4 sm:$0xff]  }
 0xc9e   :  { %v2806_v47 = vpack.c.bf16 %v2800_v30, %v2794_v43  ;;  %v2808_v48 = vpack.c.bf16 %v2802_v44, %v2796_v6  ;;  %v2907_v44 = vld [vmem:[#allocation10] sm:$0x3]  ;;  %s4690_s10 = smov [#allocation11]  }
 0xc9f   :  { %s3541_s22 = sshll.u32 %s4690_s10, 4  ;;  %s3542_s22 = int_to_ptr.vmem [resolvable:$true] %s3541_s22 }
 0xca0   :  { %3431 = vmatprep.mubr.bf16.mxu0 %v2806_v47  ;;  %3474 = vmatprep.mubr.bf16.mxu1 %v2808_v48  ;;  %s4651_s11 = scalar_lea.vmem %s3542_s22, 512  ;;  %p4656_p13 = scmp.lt.s32.totalorder %s3542_s22, %s3542_s22 }
 0xca1   :  { %3432 = vmatmul.mubr.bf16.vlgmr.msra.gmra.mrb[48].mxu0 %v2805_v38  ;;  %3475 = vmatmul.mubr.bf16.vlgmr.msra.gmra.mrb[40].mxu1 %v2807_v39  ;;  %v2912_v38 = vrot.slane %v2907_v44, %v5004_v18  ;;  %v2916_v39 = vrot.slane %v2907_v44, %v5007_v19  ;;  %p4652_p12 = scmp.ne.s32.totalorder %s3542_s22, %s4651_s11  ;;  %p4657_p0 = scmp.lt.s32.totalorder %s4651_s11, %s4651_s11 }
 0xca2   :  { %3486 = vmatpush1.bf16.msra.mxu1 %v4457_v50 }
 0xca3   :  { %3487 = vmatprep.subr.bf16.mxu1 %v4462_v52  ;;  %p4658_p1 = por %p4657_p0, %p4656_p13 }
 0xca5   :  { %p4659_p2 = pnand %p4658_p1, %p4652_p12 }
 0xca6   :  { %3488 = vmatpush1.bf16.msra.mxu1 %v4460_v53 }
 0xca7   :  { %3489 = vmatprep.subr.bf16.mxu1 %v4465_v45 }
 0xcaa   :  { %3490 = vmatpush1.bf16.msra.mxu1 %v4463_v37 }
 0xcab   :  { %3491 = vmatprep.subr.bf16.mxu1 %v4468_v32 }
 0xcae   :  { %3492 = vmatpush1.bf16.msra.mxu1 %v4466_v33 }
 0xcaf   :  { %3493 = vmatprep.subr.bf16.mxu1 %v4471_v59 }
 0xcb2   :  { %3494 = vmatpush1.bf16.msra.mxu1 %v4469_v1 }
 0xcb3   :  { %3495 = vmatprep.subr.bf16.mxu1 %v4474_v57 }
 0xcb6   :  { %3496 = vmatpush1.bf16.msra.mxu1 %v4472_v63 }
 0xcb7   :  { %3497 = vmatprep.subr.bf16.mxu1 %v4477_v4 }
 0xcba   :  { %3498 = vmatpush1.bf16.msra.mxu1 %v4475_v7 }
 0xcbb   :  { %3499 = vmatprep.subr.bf16.mxu1 %v4480_v0 }
 0xcbe   :  { %3500 = vmatpush1.bf16.msra.mxu1 %v4478_v8 }
 0xcbf   :  { %3501 = vmatprep.subr.bf16.mxu1 %v4483_v49 }
 0xcc2   :  { %3502 = vmatpush1.bf16.msra.mxu1 %v4481_v61 }
 0xcc3   :  { %3503 = vmatprep.subr.bf16.mxu1 %v4486_v9 }
 0xcc6   :  { %v2784_v5 = vpop.f32.mrb[44].mxu0  ;;  %3504 = vmatpush1.bf16.msra.mxu1 %v4484_v56 }
 0xcc7   :  { %v2785_v12 = vadd.f32 %v2784_v5, %v2290_v11  ;;  %v2786_v14 = vpop.f32.mrb[45].mxu0  ;;  %3505 = vmatprep.subr.bf16.mxu1 %v4489_v46 }
 0xcc8   :  { %v2787_v15 = vadd.f32 %v2786_v14, %v2294_v42  ;;  %v2788_v16 = vpop.f32.mrb[46].mxu0 }
 0xcc9   :  { %v2789_v13 = vadd.f32 %v2788_v16, %v2290_v11  ;;  %v2790_v20 = vpop.f32.mrb[47].mxu0  ;;  %v2797_v22 = vmax.f32 %v2785_v12, 0.0 }
 0xcca   :  { %v2791_v21 = vadd.f32 %v2790_v20, %v2294_v42  ;;  %3506 = vmatpush1.bf16.msra.mxu1 %v4487_v17  ;;  %v2798_v25 = vmax.f32 %v2787_v15, 0.0 }
 0xccb   :  { %v2803_v23 = vmax.f32 %v2789_v13, 0.0  ;;  %3507 = vmatprep.subr.bf16.mxu1 %v4492_v29 }
 0xccc   :  { %v2804_v26 = vmax.f32 %v2791_v21, 0.0 }
 0xccd   :  { %v2809_v28 = vpack.c.bf16 %v2803_v23, %v2797_v22 }
 0xcce   :  { %v2810_v31 = vpack.c.bf16 %v2804_v26, %v2798_v25  ;;  %3508 = vmatpush1.bf16.msra.mxu1 %v4490_v62 }
 0xccf   :  { %3509 = vmatprep.subr.bf16.mxu1 %v4495_v24 }
 0xcd0   :  { %3517 = vmatprep.mubr.bf16.mxu1 %v2810_v31 }
 0xcd2   :  { %3510 = vmatpush1.bf16.msra.mxu1 %v4493_v58 }
 0xcd3   :  { %3511 = vmatprep.subr.bf16.mxu1 %v4498_v51 }
 0xcd6   :  { %3512 = vmatpush1.bf16.msra.mxu1 %v4496_v34 }
 0xcd7   :  { %3513 = vmatprep.subr.bf16.mxu1 %v4501_v35 }
 0xcda   :  { %3514 = vmatpush1.bf16.msra.mxu1 %v4499_v36 }
 0xcdb   :  { %3515 = vmatprep.subr.bf16.mxu1 %v4504_v41 }
 0xcde   :  { %3516 = vmatpush1.bf16.msra.mxu1 %v4502_v27 }
 0xce1   :  { %3518 = vmatmul.mubr.bf16.vlgmr.msra.gmra.mrb[40].mxu1 %v2809_v28 }
 0xd74   :  { %v3433_v60 = vpop.f32.mrb[48].mxu0 }
 0xd75   :  { %v3435_v43 = vpop.f32.mrb[49].mxu0  ;;  %v3434_v47 = vadd.f32 %v3433_v60, %v2912_v38 }
 0xd76   :  { %v3437_v6 = vpop.f32.mrb[50].mxu0  ;;  %v3436_v48 = vadd.f32 %v3435_v43, %v2916_v39 }
 0xd77   :  { %v3439_v30 = vpop.f32.mrb[51].mxu0  ;;  %v3438_v52 = vadd.f32 %v3437_v6, %v2912_v38 }
 0xd78   :  { %v3440_v37 = vadd.f32 %v3439_v30, %v2916_v39 }
 0xdb4   :  { %v3519_v50 = vpop.f32.mrb[40].mxu1 }
 0xdb5   :  { %v3998_v53 = vadd.f32 %v3519_v50, %v3434_v47  ;;  %v3521_v45 = vpop.f32.mrb[41].mxu1 }
 0xdb6   :  { %v4000_v32 = vadd.f32 %v3521_v45, %v3436_v48  ;;  %v3523_v33 = vpop.f32.mrb[42].mxu1 }
 0xdb7   :  { %v3528_v59 = vadd.f32 %v3998_v53, %v5522_v40  ;;  %v4002_v1 = vadd.f32 %v3523_v33, %v3438_v52  ;;  %v3525_v57 = vpop.f32.mrb[43].mxu1 }
 0xdb8   :  { %v3529_v63 = vadd.f32 %v4000_v32, %v5517_v54  ;;  %v4004_v18 = vadd.f32 %v3525_v57, %v3440_v37 }
 0xdb9   :  { %3532 = vst [vmem:[#allocation11] sm:$0xff] %v3528_v59  ;;  %v3530_v19 = vadd.f32 %v4002_v1, %v5534_v3 }
 0xdba   :  { %3533 = vst.msk [vmem:[#allocation11 + $0x8] sm:$0xff] %vm107_vm0, %v3529_v63  ;;  %v3531_v4 = vadd.f32 %v4004_v18, %v5527_v55 }
 0xdbb   :  { %3534 = vst [vmem:[#allocation11 + $0x10] sm:$0xff] %v3530_v19 }
 0xdbc   :  { %3535 = vst.msk [vmem:[#allocation11 + $0x18] sm:$0xff] %vm107_vm0, %v3531_v4 }
 0xdbd   :  { %4662 = shalt.err (!%p4659_p2)
}
 0xdbe   :  { %s4663_s5 = scalar_lea.hbm %s6128_s12, 512 }
 0xdbf   :  { %p4664_p3 = scmp.ne.s32.totalorder %s6128_s12, %s4663_s5  ;;  %p4667_p4 = scmp.lt.u32.totalorder %s4663_s5, %s6128_s12 }
 0xdc1   :  { %p4669_p5 = pnand %p4667_p4, %p4664_p3 }
 0xdc3   :  { %4672 = shalt.err (!%p4669_p5)
}
 0xdc4   :  { %s4691_s14 = smov 256   ;;  %s4692_s0 = smov 16  }
 0xdc5   :  { %3547 = dma.vmem_to_hbm [thread:$0]  %s3542_s22, 512, %s6128_s12, [#allocation4], %s4691_s14, %s4691_s14, %s4692_s0  }
 0xdc6   :  { %4679 = dma.done.wait [#allocation4], 512  }
 0xdc7   :  { %4680 = vsyncadd [#allocation4], 4294966784 }
 0xdc8   :  { %3551 = vsyncpa [#allocation3], 1 }
 0xdc9   :  { %3552 = vsyncpa [#allocation6], 1 }
 0xdca   :  { %3553 = vsyncpa [#allocation9], 1 }
 0xdcb   :  { %3554 = vsyncpa [#allocation4], 1 }

</bundles_post_ra>
